<compile_context>
chip_gen: v6e
topology: v6e:2x2x1
jax: 0.10.0
libtpu: 0.0.40
codegen_flags: <defaults>
</compile_context>

<pallas_src>
import math
import functools

import jax
import jax.numpy as jnp
from jax.experimental import pallas as pl
from jax.experimental.pallas import tpu as pltpu


# ---------------------------------------------------------------------------
# Helpers
# ---------------------------------------------------------------------------
def _round_up(x: int, m: int) -> int:
    return ((x + m - 1) // m) * m


def _pad2d(x, rows: int, cols: int):
    r, c = x.shape
    if r == rows and c == cols:
        return x
    return jnp.pad(x, ((0, rows - r), (0, cols - c)))


# ---------------------------------------------------------------------------
# Pallas kernel 1: tiled matmul + bias (+ optional ReLU), f32 accumulator.
#   grid = (M/tm, N/tn, K/tk), K axis last + "arbitrary", M/N axes "parallel".
# ---------------------------------------------------------------------------
def _matmul_bias_act_kernel(a_ref, w_ref, b_ref, o_ref, acc_ref, *, apply_relu):
    @pl.when(pl.program_id(2) == 0)
    def _():
        acc_ref[...] = jnp.zeros_like(acc_ref)

    acc_ref[...] += jnp.dot(a_ref[...], w_ref[...],
                            preferred_element_type=jnp.float32)

    @pl.when(pl.program_id(2) == pl.num_programs(2) - 1)
    def _():
        out = acc_ref[...] + b_ref[...]          # (tm, tn) + (1, tn)
        if apply_relu:
            out = jnp.maximum(out, 0.0)
        o_ref[...] = out.astype(o_ref.dtype)


def matmul_bias_act(a, w, b, *, apply_relu, out_dtype=None):
    """Computes act(a @ w + b). a: (M, K), w: (K, N), b: (N,)."""
    M, K = a.shape
    K2, N = w.shape
    assert K == K2 and b.shape == (N,)
    out_dtype = out_dtype or a.dtype

    # Lane-dense padding: K and N padded to multiples of 128, M to sublane multiples.
    tm = 512 if M >= 512 else _round_up(M, 8)
    tn = 256 if N >= 256 else _round_up(N, 128)
    tk = 512 if K >= 512 else _round_up(K, 128)
    M_pad = _round_up(M, tm)
    N_pad = _round_up(N, tn)
    K_pad = _round_up(K, tk)

    a_p = _pad2d(a, M_pad, K_pad)
    w_p = _pad2d(w.astype(a.dtype), K_pad, N_pad)           # weights in activation dtype
    b_p = _pad2d(b.reshape(1, -1).astype(jnp.float32), 1, N_pad)

    grid = (M_pad // tm, N_pad // tn, K_pad // tk)

    out = pl.pallas_call(
        functools.partial(_matmul_bias_act_kernel, apply_relu=apply_relu),
        out_shape=jax.ShapeDtypeStruct((M_pad, N_pad), out_dtype),
        grid_spec=pltpu.PrefetchScalarGridSpec(
            num_scalar_prefetch=0,
            grid=grid,
            in_specs=[
                pl.BlockSpec((tm, tk), lambda i, j, k: (i, k)),
                pl.BlockSpec((tk, tn), lambda i, j, k: (k, j)),
                pl.BlockSpec((1, tn), lambda i, j, k: (0, j)),
            ],
            out_specs=pl.BlockSpec((tm, tn), lambda i, j, k: (i, j)),
            scratch_shapes=[pltpu.VMEM((tm, tn), jnp.float32)],
        ),
        compiler_params=pltpu.CompilerParams(
            dimension_semantics=("parallel", "parallel", "arbitrary"),
            vmem_limit_bytes=32 * 1024 * 1024,   # safe on v5e/v6e/v7x
        ),
    )(a_p, w_p, b_p)
    return out[:M, :N]


# ---------------------------------------------------------------------------
# Pallas kernel 2: fused global-average-pool (adaptive_avg_pool2d((1,1)) + flatten)
#   + classifier matmul + bias.  Channels-last so the lane dimension is channels;
#   the pooled feature never round-trips to HBM before the classifier.
# ---------------------------------------------------------------------------
def _gap_fc_kernel(x_ref, w_ref, b_ref, feat_ref, out_ref, *, inv_hw):
    x = x_ref[...].astype(jnp.float32)                     # (bn, HW, C)
    feat = jnp.sum(x, axis=1) * inv_hw                     # (bn, C)   sublane reduce (XLU)
    feat_ref[...] = feat.astype(feat_ref.dtype)
    logits = jnp.dot(feat, w_ref[...].astype(jnp.float32),
                     preferred_element_type=jnp.float32) + b_ref[...]
    out_ref[...] = logits.astype(out_ref.dtype)


def global_pool_classifier(x_nhwc, fc_w, fc_b, out_dtype=None):
    """Returns (feature (N, C), logits (N, n_cls))."""
    N, H, W, C = x_nhwc.shape
    C2, ncls = fc_w.shape
    assert C2 == C and fc_b.shape == (ncls,)
    out_dtype = out_dtype or x_nhwc.dtype
    HW = H * W
    x2 = x_nhwc.reshape(N, HW, C)

    bn = 8
    N_pad = _round_up(N, bn)
    if N_pad != N:
        x2 = jnp.pad(x2, ((0, N_pad - N), (0, 0), (0, 0)))
    ncls_pad = _round_up(ncls, 128)                         # lane-dense classifier output
    w_p = _pad2d(fc_w.astype(x_nhwc.dtype), C, ncls_pad)
    b_p = _pad2d(fc_b.reshape(1, -1).astype(jnp.float32), 1, ncls_pad)

    feat, logits = pl.pallas_call(
        functools.partial(_gap_fc_kernel, inv_hw=1.0 / float(HW)),
        out_shape=(jax.ShapeDtypeStruct((N_pad, C), out_dtype),
                   jax.ShapeDtypeStruct((N_pad, ncls_pad), out_dtype)),
        grid_spec=pltpu.PrefetchScalarGridSpec(
            num_scalar_prefetch=0,
            grid=(N_pad // bn,),
            in_specs=[
                pl.BlockSpec((bn, HW, C), lambda i: (i, 0, 0)),
                pl.BlockSpec((C, ncls_pad), lambda i: (0, 0)),   # resident across grid
                pl.BlockSpec((1, ncls_pad), lambda i: (0, 0)),
            ],
            out_specs=[
                pl.BlockSpec((bn, C), lambda i: (i, 0)),
                pl.BlockSpec((bn, ncls_pad), lambda i: (i, 0)),
            ],
        ),
        compiler_params=pltpu.CompilerParams(
            dimension_semantics=("parallel",),
            vmem_limit_bytes=32 * 1024 * 1024,
        ),
    )(x2, w_p, b_p)
    return feat[:N], logits[:N, :ncls]


# ---------------------------------------------------------------------------
# Conv as lane-dense GEMM (im2col done as wrapper-side layout plumbing).
# ---------------------------------------------------------------------------
def _im2col(x_nhwc, *, ksize, stride, padding):
    N, H, W, C = x_nhwc.shape
    xp = jnp.pad(x_nhwc, ((0, 0), (padding, padding), (padding, padding), (0, 0)))
    out_h = (H + 2 * padding - ksize) // stride + 1
    out_w = (W + 2 * padding - ksize) // stride + 1
    cols = []
    for kh in range(ksize):
        for kw in range(ksize):
            cols.append(xp[:, kh:kh + stride * out_h:stride,
                           kw:kw + stride * out_w:stride, :])
    patches = jnp.concatenate(cols, axis=-1)                # (N, oh, ow, k*k*C)
    return patches.reshape(N * out_h * out_w, ksize * ksize * C), out_h, out_w


def conv2d_bias_relu(x_nhwc, w_hwio, b, *, stride, padding):
    N = x_nhwc.shape[0]
    kh, kw, cin, cout = w_hwio.shape
    assert kh == kw and cin == x_nhwc.shape[-1]
    patches, out_h, out_w = _im2col(x_nhwc, ksize=kh, stride=stride, padding=padding)
    w_mat = w_hwio.reshape(kh * kw * cin, cout)              # matches (kh, kw, cin) patch order
    y = matmul_bias_act(patches, w_mat, b, apply_relu=True)
    return y.reshape(N, out_h, out_w, cout)


# ---------------------------------------------------------------------------
# Whole forward (backbone + pool + classifier) under one jit.
# ---------------------------------------------------------------------------
@jax.jit
def _cnn2d_apply(params, imgs_nhwc):
    x = conv2d_bias_relu(imgs_nhwc, params["w1"], params["b1"], stride=1, padding=1)
    x = conv2d_bias_relu(x, params["w2"], params["b2"], stride=2, padding=1)
    feat, logits = global_pool_classifier(x, params["fc_w"], params["fc_b"])
    return feat, logits


# ---------------------------------------------------------------------------
# CNN2D module wrapper (mirrors the PyTorch forward semantics)
# ---------------------------------------------------------------------------
class CNN2D:
    # TODO(synk): the timm pretrained backbone (arbitrary architecture + pretrained weights)
    # has no in-script Pallas equivalent; a small randomly-initialized 2-conv stand-in with
    # the same forward_features() contract is used instead.
    def __init__(self, in_channels=4, num_classes=10, c1=32, c2=128, key=None):
        key = jax.random.PRNGKey(0) if key is None else key
        k1, k2, k3, k4, k5, k6 = jax.random.split(key, 6)
        self.in_channels, self.num_classes, self.c1, self.c2 = in_channels, num_classes, c1, c2
        self.params = dict(
            w1=jax.random.normal(k1, (3, 3, in_channels, c1), jnp.float32) * math.sqrt(2.0 / (9 * in_channels)),
            b1=jax.random.normal(k2, (c1,), jnp.float32) * 0.02,
            w2=jax.random.normal(k3, (3, 3, c1, c2), jnp.float32) * math.sqrt(2.0 / (9 * c1)),
            b2=jax.random.normal(k4, (c2,), jnp.float32) * 0.02,
            fc_w=jax.random.normal(k5, (c2, num_classes), jnp.float32) * math.sqrt(1.0 / c2),
            fc_b=jax.random.normal(k6, (num_classes,), jnp.float32) * 0.02,
        )
        self.feature = None

    def forward_features(self, imgs_nhwc):
        feat, _ = _cnn2d_apply(self.params, imgs_nhwc)
        return feat

    def __call__(self, data):
        """data: [bs, seq_len, h, w, c]  or  [bs, h, w, c]"""
        if data.ndim == 5:
            bs, seq, h, w, c = data.shape
            # permute(0,1,4,2,3) to NCHW then back to the NHWC layout the kernels use
            # is the identity on the trailing dims -> just flatten bs*seq.
            imgs = data.reshape(bs * seq, h, w, c)
        else:
            imgs = data
        self.feature, out = _cnn2d_apply(self.params, imgs)
        if data.ndim == 5:
            out = out.reshape(bs, seq, -1)
        return out

    def get_feature(self):
        return self.feature


# ---------------------------------------------------------------------------
# Pure-JAX reference of the same forward pass (independent of the kernels).
# ---------------------------------------------------------------------------
def _reference_forward(model, data):
    bs, seq, h, w, c = data.shape
    p = model.params
    x = data.reshape(bs * seq, h, w, c)

    def conv(x, w_hwio, b, stride, pad):
        y = jax.lax.conv_general_dilated(
            x, w_hwio, (stride, stride), ((pad, pad), (pad, pad)),
            dimension_numbers=("NHWC", "HWIO", "NHWC"),
            precision=jax.lax.Precision.HIGHEST)
        return jnp.maximum(y + b, 0.0)

    x = conv(x, p["w1"], p["b1"], 1, 1)
    x = conv(x, p["w2"], p["b2"], 2, 1)
    feat = jnp.mean(x, axis=(1, 2))
    out = feat @ p["fc_w"] + p["fc_b"]
    return feat, out.reshape(bs, seq, -1)


# ---------------------------------------------------------------------------
# Demo / correctness check
# ---------------------------------------------------------------------------
if __name__ == "__main__":
    bs, seq_len, h, w, c = 2, 3, 16, 16, 4
    num_classes = 10

    key = jax.random.PRNGKey(0)
    k_data, k_model = jax.random.split(key)
    data = jax.random.normal(k_data, (bs, seq_len, h, w, c), dtype=jnp.float32)

    model = CNN2D(in_channels=c, num_classes=num_classes, key=k_model)

    out = model(data)
    out = jax.block_until_ready(out)
    feat = model.get_feature()

    assert out.shape == (bs, seq_len, num_classes)
    assert out.dtype == data.dtype
    assert feat.shape == (bs * seq_len, model.c2)

    feat_ref, out_ref = _reference_forward(model, data)
    assert jnp.allclose(feat, feat_ref, atol=1e-2, rtol=1e-2), \
        f"feature mismatch, max abs diff {float(jnp.max(jnp.abs(feat - feat_ref)))}"
    assert jnp.allclose(out, out_ref, atol=1e-2, rtol=1e-2), \
        f"output mismatch, max abs diff {float(jnp.max(jnp.abs(out - out_ref)))}"

    print("KERNEL_OK")
</pallas_src>

<mosaic_0001>
module attributes {stable_mosaic.version = 11 : i64} {
  func.func @_matmul_bias_act_kernel(%arg0: i32, %arg1: i32, %arg2: i32, %arg3: memref<512x128xf32, #tpu.memory_space<vmem>>, %arg4: memref<128x128xf32, #tpu.memory_space<vmem>>, %arg5: memref<1x128xf32, #tpu.memory_space<vmem>>, %arg6: memref<512x128xf32, #tpu.memory_space<vmem>>, %arg7: memref<512x128xf32, #tpu.memory_space<vmem>>) attributes {dimension_semantics = [#tpu.dimension_semantics<parallel>, #tpu.dimension_semantics<parallel>, #tpu.dimension_semantics<arbitrary>], iteration_bounds = array<i64: 3, 1, 1>, scalar_prefetch = 0 : i64, scratch_operands = 1 : i64, tpu.core_type = #tpu.core_type<tc>, window_params = [{transform_indices = @transform_0, window_bounds = array<i64: 512, 128>}, {transform_indices = @transform_1, window_bounds = array<i64: 128, 128>}, {transform_indices = @transform_2, window_bounds = array<i64: 1, 128>}, {transform_indices = @transform_3, window_bounds = array<i64: 512, 128>}]} {
    %c0_i32 = arith.constant 0 : i32
    %0 = arith.cmpi eq, %arg2, %c0_i32 : i32
    %1 = arith.extui %0 : i1 to i32
    %c0_i32_0 = arith.constant 0 : i32
    %2 = arith.cmpi ne, %1, %c0_i32_0 : i32
    scf.if %2 {
      %cst_10 = arith.constant 0.000000e+00 : f32
      %12 = vector.broadcast %cst_10 : f32 to vector<512x128xf32>
      %c0_11 = arith.constant 0 : index
      %c0_12 = arith.constant 0 : index
      %13 = vector.load %arg7[%c0_11, %c0_12] : memref<512x128xf32, #tpu.memory_space<vmem>>, vector<512x128xf32>
      tpu.vector_store %arg7[%c0_11, %c0_12], %12 {strides = array<i32>} : memref<512x128xf32, #tpu.memory_space<vmem>>, vector<512x128xf32>,
    } else {
    }
    %c0 = arith.constant 0 : index
    %c0_1 = arith.constant 0 : index
    %3 = vector.load %arg7[%c0, %c0_1] : memref<512x128xf32, #tpu.memory_space<vmem>>, vector<512x128xf32>
    %c0_2 = arith.constant 0 : index
    %c0_3 = arith.constant 0 : index
    %4 = vector.load %arg3[%c0_2, %c0_3] : memref<512x128xf32, #tpu.memory_space<vmem>>, vector<512x128xf32>
    %c0_4 = arith.constant 0 : index
    %c0_5 = arith.constant 0 : index
    %5 = vector.load %arg4[%c0_4, %c0_5] : memref<128x128xf32, #tpu.memory_space<vmem>>, vector<128x128xf32>
    %cst = arith.constant dense<0.000000e+00> : vector<512x128xf32>
    %6 = tpu.matmul %4, %5, %cst {dimension_numbers = #tpu.dot_dimension_numbers<[1], [0], [0], [1], [0, 0, 1, 1], [], []>} : vector<512x128xf32>, vector<128x128xf32>, vector<512x128xf32> -> vector<512x128xf32>
    %7 = arith.addf %3, %6 : vector<512x128xf32>
    %c0_6 = arith.constant 0 : index
    %c0_7 = arith.constant 0 : index
    %8 = vector.load %arg7[%c0_6, %c0_7] : memref<512x128xf32, #tpu.memory_space<vmem>>, vector<512x128xf32>
    tpu.vector_store %arg7[%c0_6, %c0_7], %7 {strides = array<i32>} : memref<512x128xf32, #tpu.memory_space<vmem>>, vector<512x128xf32>,
    %c0_i32_8 = arith.constant 0 : i32
    %9 = arith.cmpi eq, %arg2, %c0_i32_8 : i32
    %10 = arith.extui %9 : i1 to i32
    %c0_i32_9 = arith.constant 0 : i32
    %11 = arith.cmpi ne, %10, %c0_i32_9 : i32
    scf.if %11 {
      %c0_10 = arith.constant 0 : index
      %c0_11 = arith.constant 0 : index
      %12 = vector.load %arg7[%c0_10, %c0_11] : memref<512x128xf32, #tpu.memory_space<vmem>>, vector<512x128xf32>
      %c0_12 = arith.constant 0 : index
      %c0_13 = arith.constant 0 : index
      %13 = vector.load %arg5[%c0_12, %c0_13] : memref<1x128xf32, #tpu.memory_space<vmem>>, vector<1x128xf32>
      %14 = vector.broadcast %13 : vector<1x128xf32> to vector<512x128xf32>
      %15 = arith.addf %12, %14 : vector<512x128xf32>
      %cst_14 = arith.constant 0.000000e+00 : f32
      %16 = vector.broadcast %cst_14 : f32 to vector<512x128xf32>
      %17 = arith.maximumf %15, %16 : vector<512x128xf32>
      %c0_15 = arith.constant 0 : index
      %c0_16 = arith.constant 0 : index
      %18 = vector.load %arg6[%c0_15, %c0_16] : memref<512x128xf32, #tpu.memory_space<vmem>>, vector<512x128xf32>
      tpu.vector_store %arg6[%c0_15, %c0_16], %17 {strides = array<i32>} : memref<512x128xf32, #tpu.memory_space<vmem>>, vector<512x128xf32>,
    } else {
    }
    return
  }
  func.func @transform_0(%arg0: i32, %arg1: i32, %arg2: i32) -> (i32, i32) {
    %c0_i32 = arith.constant 0 : i32
    return %arg0, %arg2 : i32, i32
  }
  func.func @transform_1(%arg0: i32, %arg1: i32, %arg2: i32) -> (i32, i32) {
    %c0_i32 = arith.constant 0 : i32
    return %arg2, %arg1 : i32, i32
  }
  func.func @transform_2(%arg0: i32, %arg1: i32, %arg2: i32) -> (i32, i32) {
    %c0_i32 = arith.constant 0 : i32
    %c0_i32_0 = arith.constant 0 : i32
    return %c0_i32, %arg1 : i32, i32
  }
  func.func @transform_3(%arg0: i32, %arg1: i32, %arg2: i32) -> (i32, i32) {
    %c0_i32 = arith.constant 0 : i32
    return %arg0, %arg1 : i32, i32
  }
}

module attributes {stable_mosaic.version = 11 : i64} {
  func.func @_matmul_bias_act_kernel(%arg0: i32, %arg1: i32, %arg2: i32, %arg3: memref<384x384xf32, #tpu.memory_space<vmem>>, %arg4: memref<384x128xf32, #tpu.memory_space<vmem>>, %arg5: memref<1x128xf32, #tpu.memory_space<vmem>>, %arg6: memref<384x128xf32, #tpu.memory_space<vmem>>, %arg7: memref<384x128xf32, #tpu.memory_space<vmem>>) attributes {dimension_semantics = [#tpu.dimension_semantics<parallel>, #tpu.dimension_semantics<parallel>, #tpu.dimension_semantics<arbitrary>], iteration_bounds = array<i64: 1, 1, 1>, scalar_prefetch = 0 : i64, scratch_operands = 1 : i64, tpu.core_type = #tpu.core_type<tc>, window_params = [{transform_indices = @transform_0, window_bounds = array<i64: 384, 384>}, {transform_indices = @transform_1, window_bounds = array<i64: 384, 128>}, {transform_indices = @transform_2, window_bounds = array<i64: 1, 128>}, {transform_indices = @transform_3, window_bounds = array<i64: 384, 128>}]} {
    %c0_i32 = arith.constant 0 : i32
    %0 = arith.cmpi eq, %arg2, %c0_i32 : i32
    %1 = arith.extui %0 : i1 to i32
    %c0_i32_0 = arith.constant 0 : i32
    %2 = arith.cmpi ne, %1, %c0_i32_0 : i32
    scf.if %2 {
      %cst_10 = arith.constant 0.000000e+00 : f32
      %12 = vector.broadcast %cst_10 : f32 to vector<384x128xf32>
      %c0_11 = arith.constant 0 : index
      %c0_12 = arith.constant 0 : index
      %13 = vector.load %arg7[%c0_11, %c0_12] : memref<384x128xf32, #tpu.memory_space<vmem>>, vector<384x128xf32>
      tpu.vector_store %arg7[%c0_11, %c0_12], %12 {strides = array<i32>} : memref<384x128xf32, #tpu.memory_space<vmem>>, vector<384x128xf32>,
    } else {
    }
    %c0 = arith.constant 0 : index
    %c0_1 = arith.constant 0 : index
    %3 = vector.load %arg7[%c0, %c0_1] : memref<384x128xf32, #tpu.memory_space<vmem>>, vector<384x128xf32>
    %c0_2 = arith.constant 0 : index
    %c0_3 = arith.constant 0 : index
    %4 = vector.load %arg3[%c0_2, %c0_3] : memref<384x384xf32, #tpu.memory_space<vmem>>, vector<384x384xf32>
    %c0_4 = arith.constant 0 : index
    %c0_5 = arith.constant 0 : index
    %5 = vector.load %arg4[%c0_4, %c0_5] : memref<384x128xf32, #tpu.memory_space<vmem>>, vector<384x128xf32>
    %cst = arith.constant dense<0.000000e+00> : vector<384x128xf32>
    %6 = tpu.matmul %4, %5, %cst {dimension_numbers = #tpu.dot_dimension_numbers<[1], [0], [0], [1], [0, 0, 1, 1], [], []>} : vector<384x384xf32>, vector<384x128xf32>, vector<384x128xf32> -> vector<384x128xf32>
    %7 = arith.addf %3, %6 : vector<384x128xf32>
    %c0_6 = arith.constant 0 : index
    %c0_7 = arith.constant 0 : index
    %8 = vector.load %arg7[%c0_6, %c0_7] : memref<384x128xf32, #tpu.memory_space<vmem>>, vector<384x128xf32>
    tpu.vector_store %arg7[%c0_6, %c0_7], %7 {strides = array<i32>} : memref<384x128xf32, #tpu.memory_space<vmem>>, vector<384x128xf32>,
    %c0_i32_8 = arith.constant 0 : i32
    %9 = arith.cmpi eq, %arg2, %c0_i32_8 : i32
    %10 = arith.extui %9 : i1 to i32
    %c0_i32_9 = arith.constant 0 : i32
    %11 = arith.cmpi ne, %10, %c0_i32_9 : i32
    scf.if %11 {
      %c0_10 = arith.constant 0 : index
      %c0_11 = arith.constant 0 : index
      %12 = vector.load %arg7[%c0_10, %c0_11] : memref<384x128xf32, #tpu.memory_space<vmem>>, vector<384x128xf32>
      %c0_12 = arith.constant 0 : index
      %c0_13 = arith.constant 0 : index
      %13 = vector.load %arg5[%c0_12, %c0_13] : memref<1x128xf32, #tpu.memory_space<vmem>>, vector<1x128xf32>
      %14 = vector.broadcast %13 : vector<1x128xf32> to vector<384x128xf32>
      %15 = arith.addf %12, %14 : vector<384x128xf32>
      %cst_14 = arith.constant 0.000000e+00 : f32
      %16 = vector.broadcast %cst_14 : f32 to vector<384x128xf32>
      %17 = arith.maximumf %15, %16 : vector<384x128xf32>
      %c0_15 = arith.constant 0 : index
      %c0_16 = arith.constant 0 : index
      %18 = vector.load %arg6[%c0_15, %c0_16] : memref<384x128xf32, #tpu.memory_space<vmem>>, vector<384x128xf32>
      tpu.vector_store %arg6[%c0_15, %c0_16], %17 {strides = array<i32>} : memref<384x128xf32, #tpu.memory_space<vmem>>, vector<384x128xf32>,
    } else {
    }
    return
  }
  func.func @transform_0(%arg0: i32, %arg1: i32, %arg2: i32) -> (i32, i32) {
    %c0_i32 = arith.constant 0 : i32
    return %arg0, %arg2 : i32, i32
  }
  func.func @transform_1(%arg0: i32, %arg1: i32, %arg2: i32) -> (i32, i32) {
    %c0_i32 = arith.constant 0 : i32
    return %arg2, %arg1 : i32, i32
  }
  func.func @transform_2(%arg0: i32, %arg1: i32, %arg2: i32) -> (i32, i32) {
    %c0_i32 = arith.constant 0 : i32
    %c0_i32_0 = arith.constant 0 : i32
    return %c0_i32, %arg1 : i32, i32
  }
  func.func @transform_3(%arg0: i32, %arg1: i32, %arg2: i32) -> (i32, i32) {
    %c0_i32 = arith.constant 0 : i32
    return %arg0, %arg1 : i32, i32
  }
}

module attributes {stable_mosaic.version = 11 : i64} {
  func.func @_gap_fc_kernel(%arg0: i32, %arg1: memref<8x64x128xf32, #tpu.memory_space<vmem>>, %arg2: memref<128x128xf32, #tpu.memory_space<vmem>>, %arg3: memref<1x128xf32, #tpu.memory_space<vmem>>, %arg4: memref<8x128xf32, #tpu.memory_space<vmem>>, %arg5: memref<8x128xf32, #tpu.memory_space<vmem>>) attributes {dimension_semantics = [#tpu.dimension_semantics<parallel>], iteration_bounds = array<i64: 1>, scalar_prefetch = 0 : i64, scratch_operands = 0 : i64, tpu.core_type = #tpu.core_type<tc>, window_params = [{transform_indices = @transform_0, window_bounds = array<i64: 8, 64, 128>}, {pipeline_mode = #tpu.pipeline_mode<synchronous>, transform_indices = @transform_1, window_bounds = array<i64: 128, 128>}, {pipeline_mode = #tpu.pipeline_mode<synchronous>, transform_indices = @transform_2, window_bounds = array<i64: 1, 128>}, {transform_indices = @transform_3, window_bounds = array<i64: 8, 128>}, {transform_indices = @transform_4, window_bounds = array<i64: 8, 128>}]} {
    %c0 = arith.constant 0 : index
    %c0_0 = arith.constant 0 : index
    %c0_1 = arith.constant 0 : index
    %0 = vector.load %arg1[%c0, %c0_0, %c0_1] : memref<8x64x128xf32, #tpu.memory_space<vmem>>, vector<8x64x128xf32>
    %cst = arith.constant dense<0.000000e+00> : vector<8x128xf32>
    %1 = vector.multi_reduction <add>, %0, %cst [1] : vector<8x64x128xf32> to vector<8x128xf32>
    %cst_2 = arith.constant 1.562500e-02 : f32
    %2 = vector.broadcast %cst_2 : f32 to vector<8x128xf32>
    %3 = arith.mulf %1, %2 : vector<8x128xf32>
    %c0_3 = arith.constant 0 : index
    %c0_4 = arith.constant 0 : index
    %4 = vector.load %arg4[%c0_3, %c0_4] : memref<8x128xf32, #tpu.memory_space<vmem>>, vector<8x128xf32>
    tpu.vector_store %arg4[%c0_3, %c0_4], %3 {strides = array<i32>} : memref<8x128xf32, #tpu.memory_space<vmem>>, vector<8x128xf32>,
    %c0_5 = arith.constant 0 : index
    %c0_6 = arith.constant 0 : index
    %5 = vector.load %arg2[%c0_5, %c0_6] : memref<128x128xf32, #tpu.memory_space<vmem>>, vector<128x128xf32>
    %cst_7 = arith.constant dense<0.000000e+00> : vector<8x128xf32>
    %6 = tpu.matmul %3, %5, %cst_7 {dimension_numbers = #tpu.dot_dimension_numbers<[1], [0], [0], [1], [0, 0, 1, 1], [], []>} : vector<8x128xf32>, vector<128x128xf32>, vector<8x128xf32> -> vector<8x128xf32>
    %c0_8 = arith.constant 0 : index
    %c0_9 = arith.constant 0 : index
    %7 = vector.load %arg3[%c0_8, %c0_9] : memref<1x128xf32, #tpu.memory_space<vmem>>, vector<1x128xf32>
    %8 = vector.broadcast %7 : vector<1x128xf32> to vector<8x128xf32>
    %9 = arith.addf %6, %8 : vector<8x128xf32>
    %c0_10 = arith.constant 0 : index
    %c0_11 = arith.constant 0 : index
    %10 = vector.load %arg5[%c0_10, %c0_11] : memref<8x128xf32, #tpu.memory_space<vmem>>, vector<8x128xf32>
    tpu.vector_store %arg5[%c0_10, %c0_11], %9 {strides = array<i32>} : memref<8x128xf32, #tpu.memory_space<vmem>>, vector<8x128xf32>,
    return
  }
  func.func @transform_0(%arg0: i32) -> (i32, i32, i32) {
    %c0_i32 = arith.constant 0 : i32
    %c0_i32_0 = arith.constant 0 : i32
    %c0_i32_1 = arith.constant 0 : i32
    return %arg0, %c0_i32, %c0_i32_0 : i32, i32, i32
  }
  func.func @transform_1(%arg0: i32) -> (i32, i32) {
    %c0_i32 = arith.constant 0 : i32
    %c0_i32_0 = arith.constant 0 : i32
    %c0_i32_1 = arith.constant 0 : i32
    return %c0_i32, %c0_i32_0 : i32, i32
  }
  func.func @transform_2(%arg0: i32) -> (i32, i32) {
    %c0_i32 = arith.constant 0 : i32
    %c0_i32_0 = arith.constant 0 : i32
    %c0_i32_1 = arith.constant 0 : i32
    return %c0_i32, %c0_i32_0 : i32, i32
  }
  func.func @transform_3(%arg0: i32) -> (i32, i32) {
    %c0_i32 = arith.constant 0 : i32
    %c0_i32_0 = arith.constant 0 : i32
    return %arg0, %c0_i32 : i32, i32
  }
  func.func @transform_4(%arg0: i32) -> (i32, i32) {
    %c0_i32 = arith.constant 0 : i32
    %c0_i32_0 = arith.constant 0 : i32
    return %arg0, %c0_i32 : i32, i32
  }
}

</mosaic_0001>

<bundles_post_ra>
// kernel: _cnn2d_apply.3
= control target key start
LH: loop header
LB: loop body
LE: loop exit
PB: predicated region body
PF: predicated region fallthrough
CT: control target
= control target key end

     0   :  { %s1683_s12 = smov 0   ;;  %s1685_s13 = smov 0   ;;  %s1975_s0 = inlined_call_operand.vmem [shape: f32[1536,128], index: 0, kind: input, shape index: {}]   ;;  %s1976_s1 = inlined_call_operand.vmem [shape: f32[128,128], index: 1, kind: input, shape index: {}]   ;;  %s1977_s2 = inlined_call_operand.vmem [shape: f32[1,128], index: 2, kind: input, shape index: {}]   ;;  %s1978_s3 = inlined_call_operand.vmem [shape: f32[1536,128], index: 3, kind: output, shape index: {}]  }
   0x1   :  { %s1687_s14 = smov 0  }
   0x2 LB: > { %s32_s15 = sadd.s32 1, %s1657_s13  ;;  %p1367_p0 = scmp.ge.s32.totalorder %s1661_s14, 1  ;;  %s1661_s14 = sphi %s1687_s14, %s13_s14   ;;  %s1657_s13 = sphi %s1685_s13, %s1980_s13   ;;  %s1653_s12 = sphi %s1683_s12, %s1979_s12  }
   0x3   : > { %p34_p1 = scmp.ge.s32.totalorder %s32_s15, 3  ;;  %p188_p2 = scmp.lt.s32.totalorder %s1661_s14, 4 }
   0x5   : > { %s1982_s15 = smov (%p34_p1, %s32_s15), 0  ;;  %p189_p3 = pnand %p1367_p0, %p188_p2 }
   0x6   : > { %s1368_s5 = sshll.u32 (!%p189_p3), %s1653_s12, 6 }
   0x7   : > { %192 = sbr.rel (%p189_p3) target bundleno = 306 (0x132), region = 32  ;;  %p230_p4 = scmp.lt.s32.totalorder (!%p189_p3), %s1368_s5, 191 }
   0xc   : > { %v470_v0 = vld [vmem:[%s1976_s1 + $0x78] sm:$0xff]  ;;  %v469_v1 = vld [vmem:[%s1976_s1 + $0x70] sm:$0xff]  ;;  %v468_v2 = vld [vmem:[%s1976_s1 + $0x68] sm:$0xff]  ;;  %s1984_s5 = smov (!%p230_p4, %s1368_s5), 191 }
   0xd   : > { %1455 = vmatprep.subr.mxu0 %v470_v0  ;;  %1583 = vmatprep.subr.mxu1 %v470_v0  ;;  %v467_v3 = vld [vmem:[%s1976_s1 + $0x60] sm:$0xff]  ;;  %v466_v4 = vld [vmem:[%s1976_s1 + $0x58] sm:$0xff]  ;;  %v465_v5 = vld [vmem:[%s1976_s1 + $0x50] sm:$0xff]  ;;  %s1369_s21 = sshll.u32 %s1984_s5, 3 }
   0xe   : > { %1456 = vmatpush3.msra.mxu0 %v470_v0  ;;  %1599 = vmatpush3.msra.mxu1 %v470_v0  ;;  %v464_v6 = vld [vmem:[%s1976_s1 + $0x48] sm:$0xff]  ;;  %v463_v7 = vld [vmem:[%s1976_s1 + $0x40] sm:$0xff]  ;;  %v462_v8 = vld [vmem:[%s1976_s1 + $0x38] sm:$0xff]  ;;  %s1757_s26 = scalar_lea.vmem %s1975_s0, %s1369_s21  ;;  %s1838_s7 = scalar_lea.vmem %s1978_s3, %s1369_s21 }
   0xf   : > { %1457 = vmatprep.subr.mxu0 %v469_v1  ;;  %1584 = vmatprep.subr.mxu1 %v469_v1  ;;  %v461_v9 = vld [vmem:[%s1976_s1 + $0x30] sm:$0xff]  ;;  %v460_v10 = vld [vmem:[%s1976_s1 + $0x28] sm:$0xff]  ;;  %v459_v11 = vld [vmem:[%s1976_s1 + $0x20] sm:$0xff] }
  0x10   : > { %1458 = vmatpush3.msra.mxu0 %v469_v1  ;;  %1600 = vmatpush3.msra.mxu1 %v469_v1  ;;  %v458_v12 = vld [vmem:[%s1976_s1 + $0x18] sm:$0xff]  ;;  %v457_v13 = vld [vmem:[%s1976_s1 + $0x10] sm:$0xff]  ;;  %v456_v14 = vld [vmem:[%s1976_s1 + $0x8] sm:$0xff] }
  0x11   : > { %1459 = vmatprep.subr.mxu0 %v468_v2  ;;  %1585 = vmatprep.subr.mxu1 %v468_v2  ;;  %v455_v15 = vld [vmem:[%s1976_s1] sm:$0xff]  ;;  %v392_v18 = vld [vmem:[%s1757_s26 + $0x8] sm:$0xff]  ;;  %v393_v20 = vld [vmem:[%s1757_s26 + $0x10] sm:$0xff] }
  0x12   : > { %1460 = vmatpush3.msra.mxu0 %v468_v2  ;;  %1601 = vmatpush3.msra.mxu1 %v468_v2  ;;  %v391_v16 = vld [vmem:[%s1757_s26] sm:$0xff]  ;;  %v424_v19 = vld [vmem:[%s1757_s26 + $0x108] sm:$0xff]  ;;  %v425_v21 = vld [vmem:[%s1757_s26 + $0x110] sm:$0xff] }
  0x13   : > { %1461 = vmatprep.subr.mxu0 %v467_v3  ;;  %1586 = vmatprep.subr.mxu1 %v467_v3  ;;  %v423_v17 = vld [vmem:[%s1757_s26 + $0x100] sm:$0xff]  ;;  %v394_v22 = vld [vmem:[%s1757_s26 + $0x18] sm:$0xff]  ;;  %v396_v26 = vld [vmem:[%s1757_s26 + $0x28] sm:$0xff] }
  0x14   : > { %1462 = vmatpush3.msra.mxu0 %v467_v3  ;;  %1602 = vmatpush3.msra.mxu1 %v467_v3  ;;  %v426_v23 = vld [vmem:[%s1757_s26 + $0x118] sm:$0xff]  ;;  %v395_v24 = vld [vmem:[%s1757_s26 + $0x20] sm:$0xff]  ;;  %v428_v27 = vld [vmem:[%s1757_s26 + $0x128] sm:$0xff] }
  0x15   : > { %1463 = vmatprep.subr.mxu0 %v466_v4  ;;  %1587 = vmatprep.subr.mxu1 %v466_v4  ;;  %v427_v25 = vld [vmem:[%s1757_s26 + $0x120] sm:$0xff]  ;;  %v397_v28 = vld [vmem:[%s1757_s26 + $0x30] sm:$0xff]  ;;  %v398_v30 = vld [vmem:[%s1757_s26 + $0x38] sm:$0xff] }
  0x16   : > { %1464 = vmatpush3.msra.mxu0 %v466_v4  ;;  %1603 = vmatpush3.msra.mxu1 %v466_v4  ;;  %v429_v29 = vld [vmem:[%s1757_s26 + $0x130] sm:$0xff]  ;;  %v430_v31 = vld [vmem:[%s1757_s26 + $0x138] sm:$0xff]  ;;  %v399_v32 = vld [vmem:[%s1757_s26 + $0x40] sm:$0xff] }
  0x17   : > { %1465 = vmatprep.subr.mxu0 %v465_v5  ;;  %1588 = vmatprep.subr.mxu1 %v465_v5  ;;  %v431_v33 = vld [vmem:[%s1757_s26 + $0x140] sm:$0xff]  ;;  %v400_v34 = vld [vmem:[%s1757_s26 + $0x48] sm:$0xff]  ;;  %v401_v36 = vld [vmem:[%s1757_s26 + $0x50] sm:$0xff] }
  0x18   : > { %1466 = vmatpush3.msra.mxu0 %v465_v5  ;;  %1604 = vmatpush3.msra.mxu1 %v465_v5  ;;  %v432_v35 = vld [vmem:[%s1757_s26 + $0x148] sm:$0xff]  ;;  %v433_v37 = vld [vmem:[%s1757_s26 + $0x150] sm:$0xff]  ;;  %v402_v38 = vld [vmem:[%s1757_s26 + $0x58] sm:$0xff] }
  0x19   : > { %1467 = vmatprep.subr.mxu0 %v464_v6  ;;  %1589 = vmatprep.subr.mxu1 %v464_v6  ;;  %v434_v39 = vld [vmem:[%s1757_s26 + $0x158] sm:$0xff]  ;;  %v403_v40 = vld [vmem:[%s1757_s26 + $0x60] sm:$0xff]  ;;  %v404_v42 = vld [vmem:[%s1757_s26 + $0x68] sm:$0xff] }
  0x1a   : > { %1468 = vmatpush3.msra.mxu0 %v464_v6  ;;  %1605 = vmatpush3.msra.mxu1 %v464_v6  ;;  %v435_v41 = vld [vmem:[%s1757_s26 + $0x160] sm:$0xff]  ;;  %v436_v43 = vld [vmem:[%s1757_s26 + $0x168] sm:$0xff]  ;;  %v405_v44 = vld [vmem:[%s1757_s26 + $0x70] sm:$0xff] }
  0x1b   : > { %1469 = vmatprep.subr.mxu0 %v463_v7  ;;  %1590 = vmatprep.subr.mxu1 %v463_v7  ;;  %v437_v45 = vld [vmem:[%s1757_s26 + $0x170] sm:$0xff]  ;;  %v406_v46 = vld [vmem:[%s1757_s26 + $0x78] sm:$0xff]  ;;  %v407_v48 = vld [vmem:[%s1757_s26 + $0x80] sm:$0xff] }
  0x1c   : > { %1470 = vmatpush3.msra.mxu0 %v463_v7  ;;  %1606 = vmatpush3.msra.mxu1 %v463_v7  ;;  %v438_v47 = vld [vmem:[%s1757_s26 + $0x178] sm:$0xff]  ;;  %v439_v49 = vld [vmem:[%s1757_s26 + $0x180] sm:$0xff]  ;;  %v408_v50 = vld [vmem:[%s1757_s26 + $0x88] sm:$0xff] }
  0x1d   : > { %1471 = vmatprep.subr.mxu0 %v462_v8  ;;  %1591 = vmatprep.subr.mxu1 %v462_v8  ;;  %v440_v51 = vld [vmem:[%s1757_s26 + $0x188] sm:$0xff]  ;;  %v409_v52 = vld [vmem:[%s1757_s26 + $0x90] sm:$0xff]  ;;  %v410_v54 = vld [vmem:[%s1757_s26 + $0x98] sm:$0xff] }
  0x1e   : > { %1472 = vmatpush3.msra.mxu0 %v462_v8  ;;  %1607 = vmatpush3.msra.mxu1 %v462_v8  ;;  %v441_v53 = vld [vmem:[%s1757_s26 + $0x190] sm:$0xff]  ;;  %v442_v55 = vld [vmem:[%s1757_s26 + $0x198] sm:$0xff]  ;;  %v411_v56 = vld [vmem:[%s1757_s26 + $0xa0] sm:$0xff] }
  0x1f   : > { %1473 = vmatprep.subr.mxu0 %v461_v9  ;;  %1592 = vmatprep.subr.mxu1 %v461_v9  ;;  %v443_v57 = vld [vmem:[%s1757_s26 + $0x1a0] sm:$0xff]  ;;  %v412_v58 = vld [vmem:[%s1757_s26 + $0xa8] sm:$0xff]  ;;  %v413_v60 = vld [vmem:[%s1757_s26 + $0xb0] sm:$0xff] }
  0x20   : > { %1474 = vmatpush3.msra.mxu0 %v461_v9  ;;  %1608 = vmatpush3.msra.mxu1 %v461_v9  ;;  %v444_v59 = vld [vmem:[%s1757_s26 + $0x1a8] sm:$0xff]  ;;  %v445_v61 = vld [vmem:[%s1757_s26 + $0x1b0] sm:$0xff]  ;;  %v414_v62 = vld [vmem:[%s1757_s26 + $0xb8] sm:$0xff] }
  0x21   : > { %1475 = vmatprep.subr.mxu0 %v460_v10  ;;  %1593 = vmatprep.subr.mxu1 %v460_v10  ;;  %v446_v63 = vld [vmem:[%s1757_s26 + $0x1b8] sm:$0xff]  ;;  %v415_v0 = vld [vmem:[%s1757_s26 + $0xc0] sm:$0xff]  ;;  %v416_v2 = vld [vmem:[%s1757_s26 + $0xc8] sm:$0xff] }
  0x22   : > { %1476 = vmatpush3.msra.mxu0 %v460_v10  ;;  %1609 = vmatpush3.msra.mxu1 %v460_v10  ;;  %v447_v1 = vld [vmem:[%s1757_s26 + $0x1c0] sm:$0xff]  ;;  %v448_v3 = vld [vmem:[%s1757_s26 + $0x1c8] sm:$0xff]  ;;  %v417_v4 = vld [vmem:[%s1757_s26 + $0xd0] sm:$0xff] }
  0x23   : > { %1477 = vmatprep.subr.mxu0 %v459_v11  ;;  %1594 = vmatprep.subr.mxu1 %v459_v11  ;;  %v449_v5 = vld [vmem:[%s1757_s26 + $0x1d0] sm:$0xff]  ;;  %v418_v6 = vld [vmem:[%s1757_s26 + $0xd8] sm:$0xff]  ;;  %v419_v8 = vld [vmem:[%s1757_s26 + $0xe0] sm:$0xff] }
  0x24   : > { %1478 = vmatpush3.msra.mxu0 %v459_v11  ;;  %1610 = vmatpush3.msra.mxu1 %v459_v11  ;;  %v450_v7 = vld [vmem:[%s1757_s26 + $0x1d8] sm:$0xff]  ;;  %v451_v9 = vld [vmem:[%s1757_s26 + $0x1e0] sm:$0xff]  ;;  %v420_v10 = vld [vmem:[%s1757_s26 + $0xe8] sm:$0xff] }
  0x25   : > { %1479 = vmatprep.subr.mxu0 %v458_v12  ;;  %1595 = vmatprep.subr.mxu1 %v458_v12  ;;  %v452_v11 = vld [vmem:[%s1757_s26 + $0x1e8] sm:$0xff] }
  0x26   : > { %1480 = vmatpush3.msra.mxu0 %v458_v12  ;;  %1611 = vmatpush3.msra.mxu1 %v458_v12  ;;  %v421_v12 = vld [vmem:[%s1757_s26 + $0xf0] sm:$0xff] }
  0x27   : > { %1481 = vmatprep.subr.mxu0 %v457_v13  ;;  %1596 = vmatprep.subr.mxu1 %v457_v13 }
  0x28   : > { %1482 = vmatpush3.msra.mxu0 %v457_v13  ;;  %1612 = vmatpush3.msra.mxu1 %v457_v13  ;;  %v453_v13 = vld [vmem:[%s1757_s26 + $0x1f0] sm:$0xff] }
  0x29   : > { %1483 = vmatprep.subr.mxu0 %v456_v14  ;;  %1597 = vmatprep.subr.mxu1 %v456_v14 }
  0x2a   : > { %1484 = vmatpush3.msra.mxu0 %v456_v14  ;;  %1613 = vmatpush3.msra.mxu1 %v456_v14  ;;  %v422_v14 = vld [vmem:[%s1757_s26 + $0xf8] sm:$0xff] }
  0x2b   : > { %1485 = vmatprep.subr.mxu0 %v455_v15  ;;  %1598 = vmatprep.subr.mxu1 %v455_v15 }
  0x2c   : > { %1486 = vmatpush3.msra.mxu0 %v455_v15  ;;  %1614 = vmatpush3.msra.mxu1 %v455_v15  ;;  %v454_v15 = vld [vmem:[%s1757_s26 + $0x1f8] sm:$0xff] }
  0x2d   : > { %1487 = vmatprep.mubr.f32.mxu0 %v391_v16  ;;  %1535 = vmatprep.mubr.f32.mxu1 %v423_v17  ;;  %v1829_v16 = vld [vmem:[%s1977_s2] ss:$0 sm:$0xff] }
  0x2e   : > { %1488 = vmatmul.mubr.f32.vlgmr.msra.gmra.mxu0 %v392_v18  ;;  %1536 = vmatmul.mubr.f32.vlgmr.msra.gmra.mxu1 %v424_v19 }
  0x2f   : > { %1490 = vmatprep.mubr.f32.mxu0 %v393_v20  ;;  %1538 = vmatprep.mubr.f32.mxu1 %v425_v21 }
  0x32   : > { %1491 = vmatmul.mubr.f32.gmra.mxu0 %v394_v22  ;;  %1539 = vmatmul.mubr.f32.gmra.mxu1 %v426_v23 }
  0x33   : > { %1493 = vmatprep.mubr.f32.mxu0 %v395_v24  ;;  %1541 = vmatprep.mubr.f32.mxu1 %v427_v25 }
  0x36   : > { %1494 = vmatmul.mubr.f32.gmra.mxu0 %v396_v26  ;;  %1542 = vmatmul.mubr.f32.gmra.mxu1 %v428_v27 }
  0x37   : > { %1496 = vmatprep.mubr.f32.mxu0 %v397_v28  ;;  %1544 = vmatprep.mubr.f32.mxu1 %v429_v29 }
  0x3a   : > { %1497 = vmatmul.mubr.f32.gmra.mxu0 %v398_v30  ;;  %1545 = vmatmul.mubr.f32.gmra.mxu1 %v430_v31 }
  0x3b   : > { %1499 = vmatprep.mubr.f32.mxu0 %v399_v32  ;;  %1547 = vmatprep.mubr.f32.mxu1 %v431_v33 }
  0x3e   : > { %1500 = vmatmul.mubr.f32.gmra.mxu0 %v400_v34  ;;  %1548 = vmatmul.mubr.f32.gmra.mxu1 %v432_v35 }
  0x3f   : > { %1502 = vmatprep.mubr.f32.mxu0 %v401_v36  ;;  %1550 = vmatprep.mubr.f32.mxu1 %v433_v37 }
  0x42   : > { %1503 = vmatmul.mubr.f32.gmra.mxu0 %v402_v38  ;;  %1551 = vmatmul.mubr.f32.gmra.mxu1 %v434_v39 }
  0x43   : > { %1505 = vmatprep.mubr.f32.mxu0 %v403_v40  ;;  %1553 = vmatprep.mubr.f32.mxu1 %v435_v41 }
  0x46   : > { %1506 = vmatmul.mubr.f32.gmra.mxu0 %v404_v42  ;;  %1554 = vmatmul.mubr.f32.gmra.mxu1 %v436_v43 }
  0x47   : > { %1508 = vmatprep.mubr.f32.mxu0 %v405_v44  ;;  %1556 = vmatprep.mubr.f32.mxu1 %v437_v45 }
  0x4a   : > { %1509 = vmatmul.mubr.f32.gmra.mxu0 %v406_v46  ;;  %1557 = vmatmul.mubr.f32.gmra.mxu1 %v438_v47 }
  0x4b   : > { %1511 = vmatprep.mubr.f32.mxu0 %v407_v48  ;;  %1559 = vmatprep.mubr.f32.mxu1 %v439_v49 }
  0x4e   : > { %1512 = vmatmul.mubr.f32.gmra.mxu0 %v408_v50  ;;  %1560 = vmatmul.mubr.f32.gmra.mxu1 %v440_v51 }
  0x4f   : > { %1514 = vmatprep.mubr.f32.mxu0 %v409_v52  ;;  %1562 = vmatprep.mubr.f32.mxu1 %v441_v53 }
  0x52   : > { %1515 = vmatmul.mubr.f32.gmra.mxu0 %v410_v54  ;;  %1563 = vmatmul.mubr.f32.gmra.mxu1 %v442_v55 }
  0x53   : > { %1517 = vmatprep.mubr.f32.mxu0 %v411_v56  ;;  %1565 = vmatprep.mubr.f32.mxu1 %v443_v57 }
  0x56   : > { %1518 = vmatmul.mubr.f32.gmra.mxu0 %v412_v58  ;;  %1566 = vmatmul.mubr.f32.gmra.mxu1 %v444_v59 }
  0x57   : > { %1520 = vmatprep.mubr.f32.mxu0 %v413_v60  ;;  %1568 = vmatprep.mubr.f32.mxu1 %v445_v61 }
  0x5a   : > { %1521 = vmatmul.mubr.f32.gmra.mxu0 %v414_v62  ;;  %1569 = vmatmul.mubr.f32.gmra.mxu1 %v446_v63 }
  0x5b   : > { %1523 = vmatprep.mubr.f32.mxu0 %v415_v0  ;;  %1571 = vmatprep.mubr.f32.mxu1 %v447_v1 }
  0x5e   : > { %1524 = vmatmul.mubr.f32.gmra.mxu0 %v416_v2  ;;  %1572 = vmatmul.mubr.f32.gmra.mxu1 %v448_v3 }
  0x5f   : > { %1526 = vmatprep.mubr.f32.mxu0 %v417_v4  ;;  %1574 = vmatprep.mubr.f32.mxu1 %v449_v5 }
  0x62   : > { %1527 = vmatmul.mubr.f32.gmra.mxu0 %v418_v6  ;;  %1575 = vmatmul.mubr.f32.gmra.mxu1 %v450_v7 }
  0x63   : > { %1529 = vmatprep.mubr.f32.mxu0 %v419_v8  ;;  %1577 = vmatprep.mubr.f32.mxu1 %v451_v9 }
  0x66   : > { %1530 = vmatmul.mubr.f32.gmra.mxu0 %v420_v10  ;;  %1578 = vmatmul.mubr.f32.gmra.mxu1 %v452_v11 }
  0x67   : > { %1532 = vmatprep.mubr.f32.mxu0 %v421_v12  ;;  %1580 = vmatprep.mubr.f32.mxu1 %v453_v13 }
  0x6a   : > { %1533 = vmatmul.mubr.f32.gmra.mxu0 %v422_v14  ;;  %1581 = vmatmul.mubr.f32.gmra.mxu1 %v454_v15 }
  0xee   : > { %v1489_v17 = vpop.f32.mrf.mxu0  ;;  %v1537_v18 = vpop.f32.mrf.mxu1 }
  0xef   : > { %v1059_v19 = vadd.f32 %v1489_v17, %v1829_v16  ;;  %v1091_v20 = vadd.f32 %v1537_v18, %v1829_v16 }
  0xf0   : > { %v537_v21 = vpop.f32.mrf.mxu0  ;;  %v697_v22 = vpop.f32.mrf.mxu1 }
  0xf1   : > { %v1123_v23 = vmax.f32 %v1059_v19, 0.0  ;;  %v1155_v24 = vmax.f32 %v1091_v20, 0.0  ;;  %v1058_v25 = vadd.f32 %v1829_v16, %v537_v21  ;;  %v1090_v26 = vadd.f32 %v1829_v16, %v697_v22 }
  0xf2   : > { %v1492_v27 = vpop.f32.mrf.mxu0  ;;  %v1540_v28 = vpop.f32.mrf.mxu1 }
  0xf3   : > { %1187 = vst [vmem:[%s1838_s7 + $0x8] sm:$0xff] %v1123_v23  ;;  %1219 = vst [vmem:[%s1838_s7 + $0x108] sm:$0xff] %v1155_v24  ;;  %v1122_v29 = vmax.f32 %v1058_v25, 0.0  ;;  %v1154_v30 = vmax.f32 %v1090_v26, 0.0  ;;  %v1061_v31 = vadd.f32 %v1492_v27, %v1829_v16  ;;  %v1093_v32 = vadd.f32 %v1540_v28, %v1829_v16 }
  0xf4   : > { %v547_v33 = vpop.f32.mrf.mxu0  ;;  %v707_v34 = vpop.f32.mrf.mxu1 }
  0xf5   : > { %1186 = vst [vmem:[%s1838_s7] sm:$0xff] %v1122_v29  ;;  %1218 = vst [vmem:[%s1838_s7 + $0x100] sm:$0xff] %v1154_v30  ;;  %v1125_v35 = vmax.f32 %v1061_v31, 0.0  ;;  %v1157_v36 = vmax.f32 %v1093_v32, 0.0  ;;  %v1060_v37 = vadd.f32 %v1829_v16, %v547_v33  ;;  %v1092_v38 = vadd.f32 %v1829_v16, %v707_v34 }
  0xf6   : > { %v1495_v39 = vpop.f32.mrf.mxu0  ;;  %v1543_v40 = vpop.f32.mrf.mxu1 }
  0xf7   : > { %1189 = vst [vmem:[%s1838_s7 + $0x18] sm:$0xff] %v1125_v35  ;;  %1221 = vst [vmem:[%s1838_s7 + $0x118] sm:$0xff] %v1157_v36  ;;  %v1124_v41 = vmax.f32 %v1060_v37, 0.0  ;;  %v1156_v42 = vmax.f32 %v1092_v38, 0.0  ;;  %v1063_v43 = vadd.f32 %v1495_v39, %v1829_v16  ;;  %v1095_v44 = vadd.f32 %v1543_v40, %v1829_v16 }
  0xf8   : > { %v557_v45 = vpop.f32.mrf.mxu0  ;;  %v717_v46 = vpop.f32.mrf.mxu1 }
  0xf9   : > { %1188 = vst [vmem:[%s1838_s7 + $0x10] sm:$0xff] %v1124_v41  ;;  %1220 = vst [vmem:[%s1838_s7 + $0x110] sm:$0xff] %v1156_v42  ;;  %v1127_v47 = vmax.f32 %v1063_v43, 0.0  ;;  %v1159_v48 = vmax.f32 %v1095_v44, 0.0  ;;  %v1062_v49 = vadd.f32 %v1829_v16, %v557_v45  ;;  %v1094_v50 = vadd.f32 %v1829_v16, %v717_v46 }
  0xfa   : > { %v1498_v51 = vpop.f32.mrf.mxu0  ;;  %v1546_v52 = vpop.f32.mrf.mxu1 }
  0xfb   : > { %1191 = vst [vmem:[%s1838_s7 + $0x28] sm:$0xff] %v1127_v47  ;;  %1223 = vst [vmem:[%s1838_s7 + $0x128] sm:$0xff] %v1159_v48  ;;  %v1126_v53 = vmax.f32 %v1062_v49, 0.0  ;;  %v1158_v54 = vmax.f32 %v1094_v50, 0.0  ;;  %v1065_v55 = vadd.f32 %v1498_v51, %v1829_v16  ;;  %v1097_v56 = vadd.f32 %v1546_v52, %v1829_v16 }
  0xfc   : > { %v567_v57 = vpop.f32.mrf.mxu0  ;;  %v727_v58 = vpop.f32.mrf.mxu1 }
  0xfd   : > { %1190 = vst [vmem:[%s1838_s7 + $0x20] sm:$0xff] %v1126_v53  ;;  %1222 = vst [vmem:[%s1838_s7 + $0x120] sm:$0xff] %v1158_v54  ;;  %v1129_v59 = vmax.f32 %v1065_v55, 0.0  ;;  %v1161_v60 = vmax.f32 %v1097_v56, 0.0  ;;  %v1064_v61 = vadd.f32 %v1829_v16, %v567_v57  ;;  %v1096_v62 = vadd.f32 %v1829_v16, %v727_v58 }
  0xfe   : > { %v1501_v63 = vpop.f32.mrf.mxu0  ;;  %v1549_v0 = vpop.f32.mrf.mxu1 }
  0xff   : > { %1193 = vst [vmem:[%s1838_s7 + $0x38] sm:$0xff] %v1129_v59  ;;  %1225 = vst [vmem:[%s1838_s7 + $0x138] sm:$0xff] %v1161_v60  ;;  %v1128_v1 = vmax.f32 %v1064_v61, 0.0  ;;  %v1160_v2 = vmax.f32 %v1096_v62, 0.0  ;;  %v1067_v3 = vadd.f32 %v1501_v63, %v1829_v16  ;;  %v1099_v4 = vadd.f32 %v1549_v0, %v1829_v16 }
 0x100   : > { %v577_v5 = vpop.f32.mrf.mxu0  ;;  %v737_v6 = vpop.f32.mrf.mxu1 }
 0x101   : > { %1192 = vst [vmem:[%s1838_s7 + $0x30] sm:$0xff] %v1128_v1  ;;  %1224 = vst [vmem:[%s1838_s7 + $0x130] sm:$0xff] %v1160_v2  ;;  %v1131_v7 = vmax.f32 %v1067_v3, 0.0  ;;  %v1163_v8 = vmax.f32 %v1099_v4, 0.0  ;;  %v1066_v9 = vadd.f32 %v1829_v16, %v577_v5  ;;  %v1098_v10 = vadd.f32 %v1829_v16, %v737_v6 }
 0x102   : > { %v1504_v11 = vpop.f32.mrf.mxu0  ;;  %v1552_v12 = vpop.f32.mrf.mxu1 }
 0x103   : > { %1195 = vst [vmem:[%s1838_s7 + $0x48] sm:$0xff] %v1131_v7  ;;  %1227 = vst [vmem:[%s1838_s7 + $0x148] sm:$0xff] %v1163_v8  ;;  %v1130_v13 = vmax.f32 %v1066_v9, 0.0  ;;  %v1162_v14 = vmax.f32 %v1098_v10, 0.0  ;;  %v1069_v15 = vadd.f32 %v1504_v11, %v1829_v16  ;;  %v1101_v17 = vadd.f32 %v1552_v12, %v1829_v16 }
 0x104   : > { %v587_v18 = vpop.f32.mrf.mxu0  ;;  %v747_v19 = vpop.f32.mrf.mxu1 }
 0x105   : > { %1194 = vst [vmem:[%s1838_s7 + $0x40] sm:$0xff] %v1130_v13  ;;  %1226 = vst [vmem:[%s1838_s7 + $0x140] sm:$0xff] %v1162_v14  ;;  %v1133_v20 = vmax.f32 %v1069_v15, 0.0  ;;  %v1165_v21 = vmax.f32 %v1101_v17, 0.0  ;;  %v1068_v22 = vadd.f32 %v1829_v16, %v587_v18  ;;  %v1100_v23 = vadd.f32 %v1829_v16, %v747_v19 }
 0x106   : > { %v1507_v24 = vpop.f32.mrf.mxu0  ;;  %v1555_v25 = vpop.f32.mrf.mxu1 }
 0x107   : > { %1197 = vst [vmem:[%s1838_s7 + $0x58] sm:$0xff] %v1133_v20  ;;  %1229 = vst [vmem:[%s1838_s7 + $0x158] sm:$0xff] %v1165_v21  ;;  %v1132_v26 = vmax.f32 %v1068_v22, 0.0  ;;  %v1164_v27 = vmax.f32 %v1100_v23, 0.0  ;;  %v1071_v28 = vadd.f32 %v1507_v24, %v1829_v16  ;;  %v1103_v29 = vadd.f32 %v1555_v25, %v1829_v16 }
 0x108   : > { %v597_v30 = vpop.f32.mrf.mxu0  ;;  %v757_v31 = vpop.f32.mrf.mxu1 }
 0x109   : > { %1196 = vst [vmem:[%s1838_s7 + $0x50] sm:$0xff] %v1132_v26  ;;  %1228 = vst [vmem:[%s1838_s7 + $0x150] sm:$0xff] %v1164_v27  ;;  %v1135_v32 = vmax.f32 %v1071_v28, 0.0  ;;  %v1167_v33 = vmax.f32 %v1103_v29, 0.0  ;;  %v1070_v34 = vadd.f32 %v1829_v16, %v597_v30  ;;  %v1102_v35 = vadd.f32 %v1829_v16, %v757_v31 }
 0x10a   : > { %v1510_v36 = vpop.f32.mrf.mxu0  ;;  %v1558_v37 = vpop.f32.mrf.mxu1 }
 0x10b   : > { %1199 = vst [vmem:[%s1838_s7 + $0x68] sm:$0xff] %v1135_v32  ;;  %1231 = vst [vmem:[%s1838_s7 + $0x168] sm:$0xff] %v1167_v33  ;;  %v1134_v38 = vmax.f32 %v1070_v34, 0.0  ;;  %v1166_v39 = vmax.f32 %v1102_v35, 0.0  ;;  %v1073_v40 = vadd.f32 %v1510_v36, %v1829_v16  ;;  %v1105_v41 = vadd.f32 %v1558_v37, %v1829_v16 }
 0x10c   : > { %v607_v42 = vpop.f32.mrf.mxu0  ;;  %v767_v43 = vpop.f32.mrf.mxu1 }
 0x10d   : > { %1198 = vst [vmem:[%s1838_s7 + $0x60] sm:$0xff] %v1134_v38  ;;  %1230 = vst [vmem:[%s1838_s7 + $0x160] sm:$0xff] %v1166_v39  ;;  %v1137_v44 = vmax.f32 %v1073_v40, 0.0  ;;  %v1169_v45 = vmax.f32 %v1105_v41, 0.0  ;;  %v1072_v46 = vadd.f32 %v1829_v16, %v607_v42  ;;  %v1104_v47 = vadd.f32 %v1829_v16, %v767_v43 }
 0x10e   : > { %v1513_v48 = vpop.f32.mrf.mxu0  ;;  %v1561_v49 = vpop.f32.mrf.mxu1 }
 0x10f   : > { %1201 = vst [vmem:[%s1838_s7 + $0x78] sm:$0xff] %v1137_v44  ;;  %1233 = vst [vmem:[%s1838_s7 + $0x178] sm:$0xff] %v1169_v45  ;;  %v1136_v50 = vmax.f32 %v1072_v46, 0.0  ;;  %v1168_v51 = vmax.f32 %v1104_v47, 0.0  ;;  %v1075_v52 = vadd.f32 %v1513_v48, %v1829_v16  ;;  %v1107_v53 = vadd.f32 %v1561_v49, %v1829_v16 }
 0x110   : > { %v617_v54 = vpop.f32.mrf.mxu0  ;;  %v777_v55 = vpop.f32.mrf.mxu1 }
 0x111   : > { %1200 = vst [vmem:[%s1838_s7 + $0x70] sm:$0xff] %v1136_v50  ;;  %1232 = vst [vmem:[%s1838_s7 + $0x170] sm:$0xff] %v1168_v51  ;;  %v1139_v56 = vmax.f32 %v1075_v52, 0.0  ;;  %v1171_v57 = vmax.f32 %v1107_v53, 0.0  ;;  %v1074_v58 = vadd.f32 %v1829_v16, %v617_v54  ;;  %v1106_v59 = vadd.f32 %v1829_v16, %v777_v55 }
 0x112   : > { %v1516_v60 = vpop.f32.mrf.mxu0  ;;  %v1564_v61 = vpop.f32.mrf.mxu1 }
 0x113   : > { %1203 = vst [vmem:[%s1838_s7 + $0x88] sm:$0xff] %v1139_v56  ;;  %1235 = vst [vmem:[%s1838_s7 + $0x188] sm:$0xff] %v1171_v57  ;;  %v1138_v62 = vmax.f32 %v1074_v58, 0.0  ;;  %v1170_v63 = vmax.f32 %v1106_v59, 0.0  ;;  %v1077_v0 = vadd.f32 %v1516_v60, %v1829_v16  ;;  %v1109_v1 = vadd.f32 %v1564_v61, %v1829_v16 }
 0x114   : > { %v627_v2 = vpop.f32.mrf.mxu0  ;;  %v787_v3 = vpop.f32.mrf.mxu1 }
 0x115   : > { %1202 = vst [vmem:[%s1838_s7 + $0x80] sm:$0xff] %v1138_v62  ;;  %1234 = vst [vmem:[%s1838_s7 + $0x180] sm:$0xff] %v1170_v63  ;;  %v1141_v4 = vmax.f32 %v1077_v0, 0.0  ;;  %v1173_v5 = vmax.f32 %v1109_v1, 0.0  ;;  %v1076_v6 = vadd.f32 %v1829_v16, %v627_v2  ;;  %v1108_v7 = vadd.f32 %v1829_v16, %v787_v3 }
 0x116   : > { %v1519_v8 = vpop.f32.mrf.mxu0  ;;  %v1567_v9 = vpop.f32.mrf.mxu1 }
 0x117   : > { %1205 = vst [vmem:[%s1838_s7 + $0x98] sm:$0xff] %v1141_v4  ;;  %1237 = vst [vmem:[%s1838_s7 + $0x198] sm:$0xff] %v1173_v5  ;;  %v1140_v10 = vmax.f32 %v1076_v6, 0.0  ;;  %v1172_v11 = vmax.f32 %v1108_v7, 0.0  ;;  %v1079_v12 = vadd.f32 %v1519_v8, %v1829_v16  ;;  %v1111_v13 = vadd.f32 %v1567_v9, %v1829_v16 }
 0x118   : > { %v637_v14 = vpop.f32.mrf.mxu0  ;;  %v797_v15 = vpop.f32.mrf.mxu1 }
 0x119   : > { %1204 = vst [vmem:[%s1838_s7 + $0x90] sm:$0xff] %v1140_v10  ;;  %1236 = vst [vmem:[%s1838_s7 + $0x190] sm:$0xff] %v1172_v11  ;;  %v1143_v17 = vmax.f32 %v1079_v12, 0.0  ;;  %v1175_v18 = vmax.f32 %v1111_v13, 0.0  ;;  %v1078_v19 = vadd.f32 %v1829_v16, %v637_v14  ;;  %v1110_v20 = vadd.f32 %v1829_v16, %v797_v15 }
 0x11a   : > { %v1522_v21 = vpop.f32.mrf.mxu0  ;;  %v1570_v22 = vpop.f32.mrf.mxu1 }
 0x11b   : > { %1207 = vst [vmem:[%s1838_s7 + $0xa8] sm:$0xff] %v1143_v17  ;;  %1239 = vst [vmem:[%s1838_s7 + $0x1a8] sm:$0xff] %v1175_v18  ;;  %v1142_v23 = vmax.f32 %v1078_v19, 0.0  ;;  %v1174_v24 = vmax.f32 %v1110_v20, 0.0  ;;  %v1081_v25 = vadd.f32 %v1522_v21, %v1829_v16  ;;  %v1113_v26 = vadd.f32 %v1570_v22, %v1829_v16 }
 0x11c   : > { %v647_v27 = vpop.f32.mrf.mxu0  ;;  %v807_v28 = vpop.f32.mrf.mxu1 }
 0x11d   : > { %1206 = vst [vmem:[%s1838_s7 + $0xa0] sm:$0xff] %v1142_v23  ;;  %1238 = vst [vmem:[%s1838_s7 + $0x1a0] sm:$0xff] %v1174_v24  ;;  %v1145_v29 = vmax.f32 %v1081_v25, 0.0  ;;  %v1177_v30 = vmax.f32 %v1113_v26, 0.0  ;;  %v1080_v31 = vadd.f32 %v1829_v16, %v647_v27  ;;  %v1112_v32 = vadd.f32 %v1829_v16, %v807_v28 }
 0x11e   : > { %v1525_v33 = vpop.f32.mrf.mxu0  ;;  %v1573_v34 = vpop.f32.mrf.mxu1 }
 0x11f   : > { %1209 = vst [vmem:[%s1838_s7 + $0xb8] sm:$0xff] %v1145_v29  ;;  %1241 = vst [vmem:[%s1838_s7 + $0x1b8] sm:$0xff] %v1177_v30  ;;  %v1144_v35 = vmax.f32 %v1080_v31, 0.0  ;;  %v1176_v36 = vmax.f32 %v1112_v32, 0.0  ;;  %v1083_v37 = vadd.f32 %v1525_v33, %v1829_v16  ;;  %v1115_v38 = vadd.f32 %v1573_v34, %v1829_v16 }
 0x120   : > { %v657_v39 = vpop.f32.mrf.mxu0  ;;  %v817_v40 = vpop.f32.mrf.mxu1 }
 0x121   : > { %1208 = vst [vmem:[%s1838_s7 + $0xb0] sm:$0xff] %v1144_v35  ;;  %1240 = vst [vmem:[%s1838_s7 + $0x1b0] sm:$0xff] %v1176_v36  ;;  %v1147_v41 = vmax.f32 %v1083_v37, 0.0  ;;  %v1179_v42 = vmax.f32 %v1115_v38, 0.0  ;;  %v1082_v43 = vadd.f32 %v1829_v16, %v657_v39  ;;  %v1114_v44 = vadd.f32 %v1829_v16, %v817_v40 }
 0x122   : > { %v1528_v45 = vpop.f32.mrf.mxu0  ;;  %v1576_v46 = vpop.f32.mrf.mxu1 }
 0x123   : > { %1211 = vst [vmem:[%s1838_s7 + $0xc8] sm:$0xff] %v1147_v41  ;;  %1243 = vst [vmem:[%s1838_s7 + $0x1c8] sm:$0xff] %v1179_v42  ;;  %v1146_v47 = vmax.f32 %v1082_v43, 0.0  ;;  %v1178_v48 = vmax.f32 %v1114_v44, 0.0  ;;  %v1085_v49 = vadd.f32 %v1528_v45, %v1829_v16  ;;  %v1117_v50 = vadd.f32 %v1576_v46, %v1829_v16 }
 0x124   : > { %v667_v51 = vpop.f32.mrf.mxu0  ;;  %v827_v52 = vpop.f32.mrf.mxu1 }
 0x125   : > { %1210 = vst [vmem:[%s1838_s7 + $0xc0] sm:$0xff] %v1146_v47  ;;  %1242 = vst [vmem:[%s1838_s7 + $0x1c0] sm:$0xff] %v1178_v48  ;;  %v1149_v53 = vmax.f32 %v1085_v49, 0.0  ;;  %v1181_v54 = vmax.f32 %v1117_v50, 0.0  ;;  %v1084_v55 = vadd.f32 %v1829_v16, %v667_v51  ;;  %v1116_v56 = vadd.f32 %v1829_v16, %v827_v52 }
 0x126   : > { %v1531_v57 = vpop.f32.mrf.mxu0  ;;  %v1579_v58 = vpop.f32.mrf.mxu1 }
 0x127   : > { %1213 = vst [vmem:[%s1838_s7 + $0xd8] sm:$0xff] %v1149_v53  ;;  %1245 = vst [vmem:[%s1838_s7 + $0x1d8] sm:$0xff] %v1181_v54  ;;  %v1148_v59 = vmax.f32 %v1084_v55, 0.0  ;;  %v1180_v60 = vmax.f32 %v1116_v56, 0.0  ;;  %v1087_v61 = vadd.f32 %v1531_v57, %v1829_v16  ;;  %v1119_v62 = vadd.f32 %v1579_v58, %v1829_v16 }
 0x128   : > { %v677_v63 = vpop.f32.mrf.mxu0  ;;  %v837_v0 = vpop.f32.mrf.mxu1 }
 0x129   : > { %1212 = vst [vmem:[%s1838_s7 + $0xd0] sm:$0xff] %v1148_v59  ;;  %1244 = vst [vmem:[%s1838_s7 + $0x1d0] sm:$0xff] %v1180_v60  ;;  %v1151_v1 = vmax.f32 %v1087_v61, 0.0  ;;  %v1183_v2 = vmax.f32 %v1119_v62, 0.0  ;;  %v1086_v3 = vadd.f32 %v1829_v16, %v677_v63  ;;  %v1118_v4 = vadd.f32 %v1829_v16, %v837_v0 }
 0x12a   : > { %v1534_v5 = vpop.f32.mrf.mxu0  ;;  %v1582_v6 = vpop.f32.mrf.mxu1 }
 0x12b   : > { %1215 = vst [vmem:[%s1838_s7 + $0xe8] sm:$0xff] %v1151_v1  ;;  %1247 = vst [vmem:[%s1838_s7 + $0x1e8] sm:$0xff] %v1183_v2  ;;  %v1150_v7 = vmax.f32 %v1086_v3, 0.0  ;;  %v1182_v8 = vmax.f32 %v1118_v4, 0.0  ;;  %v1089_v9 = vadd.f32 %v1534_v5, %v1829_v16  ;;  %v1121_v10 = vadd.f32 %v1582_v6, %v1829_v16 }
 0x12c   : > { %v687_v11 = vpop.f32.mrf.mxu0  ;;  %v847_v12 = vpop.f32.mrf.mxu1 }
 0x12d   : > { %1214 = vst [vmem:[%s1838_s7 + $0xe0] sm:$0xff] %v1150_v7  ;;  %1246 = vst [vmem:[%s1838_s7 + $0x1e0] sm:$0xff] %v1182_v8  ;;  %v1153_v13 = vmax.f32 %v1089_v9, 0.0  ;;  %v1185_v14 = vmax.f32 %v1121_v10, 0.0  ;;  %v1088_v15 = vadd.f32 %v1829_v16, %v687_v11  ;;  %v1120_v17 = vadd.f32 %v1829_v16, %v847_v12 }
 0x12f   : > { %1217 = vst [vmem:[%s1838_s7 + $0xf8] sm:$0xff] %v1153_v13  ;;  %1249 = vst [vmem:[%s1838_s7 + $0x1f8] sm:$0xff] %v1185_v14  ;;  %v1152_v18 = vmax.f32 %v1088_v15, 0.0  ;;  %v1184_v19 = vmax.f32 %v1120_v17, 0.0 }
 0x131   : > { %1216 = vst [vmem:[%s1838_s7 + $0xf0] sm:$0xff] %v1152_v18  ;;  %1248 = vst [vmem:[%s1838_s7 + $0x1f0] sm:$0xff] %v1184_v19 }
 0x132 PF: > { %s13_s14 = sadd.s32 1, %s1661_s14   ;;  %s1979_s12 = smov %s1657_s13 }
 0x133   : > { %p10_p5 = scmp.ge.s32.totalorder %s13_s14, 5   ;;  %s1980_s13 = smov %s1982_s15 }
 0x135   :  { %12 = sbr.rel (!%p10_p5) target bundleno = 2 (0x2), region = 76 }

// kernel: _cnn2d_apply.5
= control target key start
LH: loop header
LB: loop body
LE: loop exit
PB: predicated region body
PF: predicated region fallthrough
CT: control target
= control target key end

     0   :  { %10 = vsyncpa [#allocation3], 0  ;;  %v441_v1 = vmov 0.0   ;;  %vm442_vm0 = vmmov 0   ;;  %s736_s0 = inlined_call_operand.vmem [shape: f32[8,64,128], index: 0, kind: input, shape index: {}]   ;;  %s737_s1 = inlined_call_operand.vmem [shape: f32[128,128], index: 1, kind: input, shape index: {}]   ;;  %s738_s2 = inlined_call_operand.vmem [shape: f32[1,128], index: 2, kind: input, shape index: {}]   ;;  %s739_s3 = inlined_call_operand.hbm [shape: f32[8,128], index: 3, kind: output, shape index: {0}]   ;;  %s740_s4 = inlined_call_operand.hbm [shape: f32[8,128], index: 4, kind: output, shape index: {1}]  }
   0x1   :  { %v233_v0 = vld [vmem:[%s737_s1 + $0x78] sm:$0xff]  ;;  %358 = vmatprep.subr.mxu0 %v441_v1  ;;  %v232_v2 = vld [vmem:[%s737_s1 + $0x70] sm:$0xff]  ;;  %390 = vmatprep.mubr.msk.f32.mxu0 %vm442_vm0, %v441_v1  ;;  %v231_v3 = vld [vmem:[%s737_s1 + $0x68] sm:$0xff] }
   0x2   :  { %359 = vmatpush3.msra.mxu0 %v233_v0  ;;  %v230_v4 = vld [vmem:[%s737_s1 + $0x60] sm:$0xff]  ;;  %v19_v6 = vld [vmem:[%s736_s0 + $0x8] sm:$0xff]  ;;  %v20_v7 = vld [vmem:[%s736_s0 + $0x10] sm:$0xff] }
   0x3   :  { %360 = vmatprep.subr.mxu0 %v441_v1  ;;  %v18_v5 = vld [vmem:[%s736_s0] sm:$0xff]  ;;  %v229_v9 = vld [vmem:[%s737_s1 + $0x58] sm:$0xff]  ;;  %v27_v12 = vld [vmem:[%s736_s0 + $0x48] sm:$0xff] }
   0x4   :  { %361 = vmatpush3.msra.mxu0 %v232_v2  ;;  %v82_v8 = vadd.f32 %v19_v6, %v18_v5  ;;  %v21_v10 = vld [vmem:[%s736_s0 + $0x18] sm:$0xff]  ;;  %v26_v11 = vld [vmem:[%s736_s0 + $0x40] sm:$0xff]  ;;  %v28_v13 = vld [vmem:[%s736_s0 + $0x50] sm:$0xff] }
   0x5   :  { %362 = vmatprep.subr.mxu0 %v441_v1  ;;  %v228_v15 = vld [vmem:[%s737_s1 + $0x50] sm:$0xff]  ;;  %v22_v16 = vld [vmem:[%s736_s0 + $0x20] sm:$0xff]  ;;  %v95_v17 = vadd.f32 %v27_v12, %v26_v11  ;;  %v227_v18 = vld [vmem:[%s737_s1 + $0x48] sm:$0xff] }
   0x6   :  { %363 = vmatpush3.msra.mxu0 %v231_v3  ;;  %v83_v14 = vadd.f32 %v82_v8, %v20_v7  ;;  %v29_v19 = vld [vmem:[%s736_s0 + $0x58] sm:$0xff]  ;;  %v34_v20 = vld [vmem:[%s736_s0 + $0x80] sm:$0xff]  ;;  %v23_v22 = vld [vmem:[%s736_s0 + $0x28] sm:$0xff] }
   0x7   :  { %364 = vmatprep.subr.mxu0 %v441_v1  ;;  %v35_v23 = vld [vmem:[%s736_s0 + $0x88] sm:$0xff]  ;;  %v36_v24 = vld [vmem:[%s736_s0 + $0x90] sm:$0xff]  ;;  %v96_v25 = vadd.f32 %v95_v17, %v28_v13  ;;  %v226_v26 = vld [vmem:[%s737_s1 + $0x40] sm:$0xff] }
   0x8   :  { %365 = vmatpush3.msra.mxu0 %v230_v4  ;;  %v84_v21 = vadd.f32 %v83_v14, %v21_v10  ;;  %v24_v27 = vld [vmem:[%s736_s0 + $0x30] sm:$0xff]  ;;  %v30_v28 = vld [vmem:[%s736_s0 + $0x60] sm:$0xff]  ;;  %v108_v30 = vadd.f32 %v35_v23, %v34_v20  ;;  %v225_v31 = vld [vmem:[%s737_s1 + $0x38] sm:$0xff] }
   0x9   :  { %366 = vmatprep.subr.mxu0 %v441_v1  ;;  %v37_v32 = vld [vmem:[%s736_s0 + $0x98] sm:$0xff]  ;;  %v42_v33 = vld [vmem:[%s736_s0 + $0xc0] sm:$0xff]  ;;  %v43_v34 = vld [vmem:[%s736_s0 + $0xc8] sm:$0xff]  ;;  %v97_v35 = vadd.f32 %v96_v25, %v29_v19 }
   0xa   :  { %367 = vmatpush3.msra.mxu0 %v229_v9  ;;  %v85_v29 = vadd.f32 %v84_v21, %v22_v16  ;;  %v25_v36 = vld [vmem:[%s736_s0 + $0x38] sm:$0xff]  ;;  %v31_v37 = vld [vmem:[%s736_s0 + $0x68] sm:$0xff]  ;;  %v44_v38 = vld [vmem:[%s736_s0 + $0xd0] sm:$0xff]  ;;  %v109_v40 = vadd.f32 %v108_v30, %v36_v24  ;;  %v121_v41 = vadd.f32 %v43_v34, %v42_v33 }
   0xb   :  { %368 = vmatprep.subr.mxu0 %v441_v1  ;;  %v224_v42 = vld [vmem:[%s737_s1 + $0x30] sm:$0xff]  ;;  %v38_v44 = vld [vmem:[%s736_s0 + $0xa0] sm:$0xff]  ;;  %v45_v45 = vld [vmem:[%s736_s0 + $0xd8] sm:$0xff]  ;;  %v98_v46 = vadd.f32 %v97_v35, %v30_v28 }
   0xc   :  { %369 = vmatpush3.msra.mxu0 %v228_v15  ;;  %v86_v39 = vadd.f32 %v85_v29, %v23_v22  ;;  %v32_v43 = vld [vmem:[%s736_s0 + $0x70] sm:$0xff]  ;;  %v50_v47 = vld [vmem:[%s736_s0 + $0x100] sm:$0xff]  ;;  %v51_v48 = vld [vmem:[%s736_s0 + $0x108] sm:$0xff]  ;;  %v110_v51 = vadd.f32 %v109_v40, %v37_v32  ;;  %v122_v52 = vadd.f32 %v121_v41, %v44_v38 }
   0xd   :  { %370 = vmatprep.subr.mxu0 %v441_v1  ;;  %v52_v49 = vld [vmem:[%s736_s0 + $0x110] sm:$0xff]  ;;  %v223_v53 = vld [vmem:[%s737_s1 + $0x28] sm:$0xff]  ;;  %v33_v54 = vld [vmem:[%s736_s0 + $0x78] sm:$0xff]  ;;  %v99_v57 = vadd.f32 %v98_v46, %v31_v37  ;;  %v134_v58 = vadd.f32 %v51_v48, %v50_v47 }
   0xe   :  { %371 = vmatpush3.msra.mxu0 %v227_v18  ;;  %v87_v50 = vadd.f32 %v86_v39, %v24_v27  ;;  %v39_v55 = vld [vmem:[%s736_s0 + $0xa8] sm:$0xff]  ;;  %v46_v56 = vld [vmem:[%s736_s0 + $0xe0] sm:$0xff]  ;;  %v40_v59 = vld [vmem:[%s736_s0 + $0xb0] sm:$0xff]  ;;  %v111_v63 = vadd.f32 %v110_v51, %v38_v44  ;;  %v123_v0 = vadd.f32 %v122_v52, %v45_v45 }
   0xf   :  { %372 = vmatprep.subr.mxu0 %v441_v1  ;;  %v53_v60 = vld [vmem:[%s736_s0 + $0x118] sm:$0xff]  ;;  %v58_v61 = vld [vmem:[%s736_s0 + $0x140] sm:$0xff]  ;;  %v47_v3 = vld [vmem:[%s736_s0 + $0xe8] sm:$0xff]  ;;  %v100_v6 = vadd.f32 %v99_v57, %v32_v43  ;;  %v135_v7 = vadd.f32 %v134_v58, %v52_v49 }
  0x10   :  { %373 = vmatpush3.msra.mxu0 %v226_v26  ;;  %v88_v62 = vadd.f32 %v87_v50, %v25_v36  ;;  %v222_v2 = vld [vmem:[%s737_s1 + $0x20] sm:$0xff]  ;;  %v59_v4 = vld [vmem:[%s736_s0 + $0x148] sm:$0xff]  ;;  %v60_v5 = vld [vmem:[%s736_s0 + $0x150] sm:$0xff]  ;;  %v112_v12 = vadd.f32 %v111_v63, %v39_v55  ;;  %v124_v13 = vadd.f32 %v123_v0, %v46_v56 }
  0x11   :  { %374 = vmatprep.subr.mxu0 %v441_v1  ;;  %v41_v8 = vld [vmem:[%s736_s0 + $0xb8] sm:$0xff]  ;;  %v48_v9 = vld [vmem:[%s736_s0 + $0xf0] sm:$0xff]  ;;  %v54_v10 = vld [vmem:[%s736_s0 + $0x120] sm:$0xff]  ;;  %v147_v14 = vadd.f32 %v59_v4, %v58_v61  ;;  %v101_v19 = vadd.f32 %v100_v6, %v33_v54  ;;  %v136_v20 = vadd.f32 %v135_v7, %v53_v60 }
  0x12   :  { %375 = vmatpush3.msra.mxu0 %v225_v31  ;;  %v89_v11 = vrot.slane %v88_v62, 4  ;;  %v221_v15 = vld [vmem:[%s737_s1 + $0x18] sm:$0xff]  ;;  %v66_v17 = vld [vmem:[%s736_s0 + $0x180] sm:$0xff]  ;;  %v67_v18 = vld [vmem:[%s736_s0 + $0x188] sm:$0xff]  ;;  %v113_v25 = vadd.f32 %v112_v12, %v40_v59  ;;  %v125_v26 = vadd.f32 %v124_v13, %v47_v3 }
  0x13   :  { %376 = vmatprep.subr.mxu0 %v441_v1  ;;  %v61_v16 = vld [vmem:[%s736_s0 + $0x158] sm:$0xff]  ;;  %v55_v22 = vld [vmem:[%s736_s0 + $0x128] sm:$0xff]  ;;  %v68_v23 = vld [vmem:[%s736_s0 + $0x190] sm:$0xff]  ;;  %v148_v27 = vadd.f32 %v147_v14, %v60_v5  ;;  %v102_v31 = vrot.slane %v101_v19, 4  ;;  %v137_v32 = vadd.f32 %v136_v20, %v54_v10  ;;  %v160_v33 = vadd.f32 %v67_v18, %v66_v17 }
  0x14   :  { %377 = vmatpush3.msra.mxu0 %v224_v42  ;;  %v49_v21 = vld [vmem:[%s736_s0 + $0xf8] sm:$0xff]  ;;  %v90_v24 = vadd.f32 %v89_v11, %v88_v62  ;;  %v56_v28 = vld [vmem:[%s736_s0 + $0x130] sm:$0xff]  ;;  %v62_v29 = vld [vmem:[%s736_s0 + $0x160] sm:$0xff]  ;;  %v114_v38 = vadd.f32 %v113_v25, %v41_v8  ;;  %v126_v39 = vadd.f32 %v125_v26, %v48_v9 }
  0x15   :  { %378 = vmatprep.subr.mxu0 %v441_v1  ;;  %v69_v30 = vld [vmem:[%s736_s0 + $0x198] sm:$0xff]  ;;  %v74_v34 = vld [vmem:[%s736_s0 + $0x1c0] sm:$0xff]  ;;  %v75_v35 = vld [vmem:[%s736_s0 + $0x1c8] sm:$0xff]  ;;  %v149_v40 = vadd.f32 %v148_v27, %v61_v16  ;;  %v103_v43 = vadd.f32 %v102_v31, %v101_v19  ;;  %v138_v44 = vadd.f32 %v137_v32, %v55_v22  ;;  %v161_v45 = vadd.f32 %v160_v33, %v68_v23 }
  0x16   :  { %379 = vmatpush3.msra.mxu0 %v223_v53  ;;  %v76_v36 = vld [vmem:[%s736_s0 + $0x1d0] sm:$0xff]  ;;  %v91_v37 = vrot.slane %v90_v24, 2  ;;  %v63_v42 = vld [vmem:[%s736_s0 + $0x168] sm:$0xff]  ;;  %v173_v46 = vadd.f32 %v75_v35, %v74_v34  ;;  %v57_v47 = vld [vmem:[%s736_s0 + $0x138] sm:$0xff]  ;;  %v115_v51 = vrot.slane %v114_v38, 4  ;;  %v127_v52 = vadd.f32 %v126_v39, %v49_v21 }
  0x17   :  { %380 = vmatprep.subr.mxu0 %v441_v1  ;;  %v220_v41 = vld [vmem:[%s737_s1 + $0x10] sm:$0xff]  ;;  %v70_v48 = vld [vmem:[%s736_s0 + $0x1a0] sm:$0xff]  ;;  %v77_v49 = vld [vmem:[%s736_s0 + $0x1d8] sm:$0xff]  ;;  %v150_v53 = vadd.f32 %v149_v40, %v62_v29  ;;  %v104_v56 = vrot.slane %v103_v43, 2  ;;  %v139_v57 = vadd.f32 %v138_v44, %v56_v28  ;;  %v162_v58 = vadd.f32 %v161_v45, %v69_v30 }
  0x18   :  { %381 = vmatpush3.msra.mxu0 %v222_v2  ;;  %v92_v50 = vadd.f32 %v91_v37, %v90_v24  ;;  %v219_v54 = vld [vmem:[%s737_s1 + $0x8] sm:$0xff]  ;;  %v64_v55 = vld [vmem:[%s736_s0 + $0x170] sm:$0xff]  ;;  %v174_v59 = vadd.f32 %v173_v46, %v76_v36 }
  0x19   :  { %382 = vmatprep.subr.mxu0 %v441_v1 }
  0x1a   :  { %383 = vmatpush3.msra.mxu0 %v221_v15 }
  0x1b   :  { %384 = vmatprep.subr.mxu0 %v441_v1 }
  0x1c   :  { %11 = vsyncpa [#allocation5], 0  ;;  %385 = vmatpush3.msra.mxu0 %v220_v41  ;;  %v71_v60 = vld [vmem:[%s736_s0 + $0x1a8] sm:$0xff]  ;;  %v78_v61 = vld [vmem:[%s736_s0 + $0x1e0] sm:$0xff]  ;;  %v93_v62 = vrot.slane %v92_v50, 1  ;;  %v116_v63 = vadd.f32 %v115_v51, %v114_v38  ;;  %v128_v0 = vrot.slane %v127_v52, 4  ;;  %v151_v2 = vadd.f32 %v150_v53, %v63_v42 }
  0x1d   :  { %386 = vmatprep.subr.mxu0 %v441_v1  ;;  %v218_v3 = vld [vmem:[%s737_s1] sm:$0xff]  ;;  %v65_v4 = vld [vmem:[%s736_s0 + $0x178] sm:$0xff]  ;;  %v105_v5 = vadd.f32 %v104_v56, %v103_v43  ;;  %v140_v6 = vadd.f32 %v139_v57, %v57_v47  ;;  %v163_v7 = vadd.f32 %v162_v58, %v70_v48  ;;  %v175_v8 = vadd.f32 %v174_v59, %v77_v49  ;;  %v72_v9 = vld [vmem:[%s736_s0 + $0x1b0] sm:$0xff] }
  0x1e   :  { %387 = vmatpush3.msra.mxu0 %v219_v54  ;;  %v79_v10 = vld [vmem:[%s736_s0 + $0x1e8] sm:$0xff]  ;;  %v94_v11 = vadd.f32 %v93_v62, %v92_v50  ;;  %v117_v12 = vrot.slane %v116_v63, 2  ;;  %v129_v13 = vadd.f32 %v128_v0, %v127_v52  ;;  %v152_v14 = vadd.f32 %v151_v2, %v64_v55  ;;  %v73_v19 = vld [vmem:[%s736_s0 + $0x1b8] sm:$0xff]  ;;  %v80_v20 = vld [vmem:[%s736_s0 + $0x1f0] sm:$0xff] }
  0x1f   :  { %388 = vmatprep.subr.mxu0 %v441_v1  ;;  %v106_v15 = vrot.slane %v105_v5, 1  ;;  %v141_v16 = vrot.slane %v140_v6, 4  ;;  %v164_v17 = vadd.f32 %v163_v7, %v71_v60  ;;  %v176_v18 = vadd.f32 %v175_v8, %v78_v61  ;;  %v81_v28 = vld [vmem:[%s736_s0 + $0x1f8] sm:$0xff]  ;;  %s443_s0 = smov [#allocation2]  }
  0x20   :  { %389 = vmatpush3.msra.mxu0 %v218_v3  ;;  %v118_v21 = vadd.f32 %v117_v12, %v116_v63  ;;  %v130_v22 = vrot.slane %v129_v13, 2  ;;  %v153_v23 = vadd.f32 %v152_v14, %v65_v4  ;;  %v186_v24 = vmul.f32 0.015625, %v94_v11  ;;  %s318_s18 = sshll.u32 %s443_s0, 4  ;;  %s319_s18 = int_to_ptr.vmem [resolvable:$true] %s318_s18 }
  0x21   :  { %v107_v25 = vadd.f32 %v106_v15, %v105_v5  ;;  %v142_v26 = vadd.f32 %v141_v16, %v140_v6  ;;  %v165_v1 = vadd.f32 %v164_v17, %v72_v9  ;;  %v177_v27 = vadd.f32 %v176_v18, %v79_v10  ;;  %s397_s19 = scalar_lea.vmem %s319_s18, 128  ;;  %p402_p1 = scmp.lt.s32.totalorder %s319_s18, %s319_s18 }
  0x22   :  { %v119_v29 = vrot.slane %v118_v21, 1  ;;  %v131_v30 = vadd.f32 %v130_v22, %v129_v13  ;;  %v154_v31 = vrot.slane %v153_v23, 4  ;;  %vm202_vm1 = vcmask 1041409   ;;  %p398_p0 = scmp.ne.s32.totalorder %s319_s18, %s397_s19  ;;  %p403_p2 = scmp.lt.s32.totalorder %s397_s19, %s397_s19 }
  0x23   :  { %v143_v32 = vrot.slane %v142_v26, 2  ;;  %v166_v33 = vadd.f32 %v165_v1, %v73_v19  ;;  %v178_v34 = vadd.f32 %v177_v27, %v80_v20  ;;  %v187_v35 = vmul.f32 0.015625, %v107_v25 }
  0x24   :  { %v120_v36 = vadd.f32 %v119_v29, %v118_v21  ;;  %v132_v37 = vrot.slane %v131_v30, 1  ;;  %v155_v38 = vadd.f32 %v154_v31, %v153_v23  ;;  %vm204_vm2 = vcmask 1042434   ;;  %p404_p3 = por %p403_p2, %p402_p1 }
  0x25   :  { %v144_v39 = vadd.f32 %v143_v32, %v142_v26  ;;  %v167_v40 = vrot.slane %v166_v33, 4  ;;  %v179_v41 = vadd.f32 %v178_v34, %v81_v28  ;;  %v203_v42 = vsel %vm202_vm1, %v187_v35, %v186_v24 }
  0x26   :  { %v133_v43 = vadd.f32 %v132_v37, %v131_v30  ;;  %v156_v44 = vrot.slane %v155_v38, 2  ;;  %v188_v45 = vmul.f32 0.015625, %v120_v36  ;;  %vm206_vm3 = vcmask 1043459   ;;  %p405_p4 = pnand %p404_p3, %p398_p0 }
  0x27   :  { %v145_v46 = vrot.slane %v144_v39, 1  ;;  %v168_v47 = vadd.f32 %v167_v40, %v166_v33  ;;  %v180_v48 = vrot.slane %v179_v41, 4  ;;  %vm208_vm4 = vcmask 1044484  }
  0x28   :  { %v157_v49 = vadd.f32 %v156_v44, %v155_v38  ;;  %v189_v50 = vmul.f32 0.015625, %v133_v43  ;;  %v205_v51 = vsel %vm204_vm2, %v188_v45, %v203_v42  ;;  %vm210_vm5 = vcmask 1045509  }
  0x29   :  { %v146_v52 = vadd.f32 %v145_v46, %v144_v39  ;;  %v169_v53 = vrot.slane %v168_v47, 2  ;;  %v181_v54 = vadd.f32 %v180_v48, %v179_v41  ;;  %vm212_vm6 = vcmask 1046534  }
  0x2a   :  { %v158_v55 = vrot.slane %v157_v49, 1  ;;  %v207_v56 = vsel %vm206_vm3, %v189_v50, %v205_v51  ;;  %vm214_vm7 = vcmask 1047559  }
  0x2b   :  { %v170_v57 = vadd.f32 %v169_v53, %v168_v47  ;;  %v182_v58 = vrot.slane %v181_v54, 2  ;;  %v190_v59 = vmul.f32 0.015625, %v146_v52 }
  0x2c   :  { %v159_v60 = vadd.f32 %v158_v55, %v157_v49 }
  0x2d   :  { %v171_v61 = vrot.slane %v170_v57, 1  ;;  %v183_v62 = vadd.f32 %v182_v58, %v181_v54  ;;  %v209_v63 = vsel %vm208_vm4, %v190_v59, %v207_v56 }
  0x2e   :  { %v191_v0 = vmul.f32 0.015625, %v159_v60 }
  0x2f   :  { %v172_v2 = vadd.f32 %v171_v61, %v170_v57  ;;  %v184_v3 = vrot.slane %v183_v62, 1 }
  0x30   :  { %v211_v4 = vsel %vm210_vm5, %v191_v0, %v209_v63 }
  0x31   :  { %v185_v5 = vadd.f32 %v184_v3, %v183_v62  ;;  %v192_v6 = vmul.f32 0.015625, %v172_v2 }
  0x33   :  { %v193_v7 = vmul.f32 0.015625, %v185_v5  ;;  %v213_v8 = vsel %vm212_vm6, %v192_v6, %v211_v4 }
  0x35   :  { %v215_v9 = vsel %vm214_vm7, %v193_v7, %v213_v8 }
  0x36   :  { %391 = vmatmul.mubr.f32.vlgmr.msra.gmra.mxu0 %v215_v9  ;;  %217 = vst [vmem:[#allocation2] sm:$0xff] %v215_v9 }
  0x37   :  { %408 = shalt.err (!%p405_p4)
}
  0x38   :  { %321 = dma.vmem_to_hbm [thread:$0]  %s319_s18, 128, %s739_s3, [#allocation3]   ;;  %v340_v10 = vld [vmem:[%s738_s2] ss:$0 sm:$0xff] }
  0x39   :  { %s444_s24 = smov [#allocation4]  }
  0x3a   :  { %s328_s25 = sshll.u32 %s444_s24, 4  ;;  %s329_s25 = int_to_ptr.vmem [resolvable:$true] %s328_s25 }
  0x3b   :  { %s417_s26 = scalar_lea.vmem %s329_s25, 128  ;;  %p422_p6 = scmp.lt.s32.totalorder %s329_s25, %s329_s25 }
  0x3c   :  { %p418_p5 = scmp.ne.s32.totalorder %s329_s25, %s417_s26  ;;  %p423_p7 = scmp.lt.s32.totalorder %s417_s26, %s417_s26 }
  0x3e   :  { %p424_p8 = por %p423_p7, %p422_p6 }
  0x40   :  { %p425_p9 = pnand %p424_p8, %p418_p5 }
  0xf6   :  { %v307_v11 = vpop.f32.mrf.mxu0 }
  0xf7   :  { %v308_v12 = vadd.f32 %v340_v10, %v307_v11 }
  0xf8   :  { %v392_v13 = vpop.f32.mrf.mxu0 }
  0xf9   :  { %311 = vst [vmem:[#allocation4] sm:$0xff] %v308_v12 }
  0xfa   :  { %428 = shalt.err (!%p425_p9)
}
  0xfb   :  { %331 = dma.vmem_to_hbm [thread:$0]  %s329_s25, 128, %s740_s4, [#allocation5]  }
  0xfc   :  { %437 = dma.done.wait [#allocation3], 128  }
  0xfd   :  { %438 = vsyncadd [#allocation3], 4294967168 }
  0xfe   :  { %439 = dma.done.wait [#allocation5], 128  }
  0xff   :  { %440 = vsyncadd [#allocation5], 4294967168 }
 0x100   :  { %338 = vsyncpa [#allocation3], 1 }
 0x101   :  { %339 = vsyncpa [#allocation5], 1 }

// kernel: _cnn2d_apply.4
= control target key start
LH: loop header
LB: loop body
LE: loop exit
PB: predicated region body
PF: predicated region fallthrough
CT: control target
= control target key end

     0   :  { %v1452_v0 = vmov 0.0   ;;  %s2379_s1 = inlined_call_operand.vmem [shape: f32[384,128], index: 1, kind: input, shape index: {}]   ;;  %s2380_s0 = inlined_call_operand.vmem [shape: f32[384,384], index: 0, kind: input, shape index: {}]   ;;  %s2381_s2 = inlined_call_operand.vmem [shape: f32[1,128], index: 2, kind: input, shape index: {}]   ;;  %s2382_s3 = inlined_call_operand.vmem [shape: f32[384,128], index: 3, kind: output, shape index: {}]  }
   0x1   :  { %306 = vmatprep.subr.mxu0 %v1452_v0  ;;  %1387 = vmatprep.subr.mxu1 %v1452_v0  ;;  %v273_v1 = vld [vmem:[%s2379_s1 + $0x78] sm:$0xff]  ;;  %v272_v2 = vld [vmem:[%s2379_s1 + $0x70] sm:$0xff]  ;;  %v271_v3 = vld [vmem:[%s2379_s1 + $0x68] sm:$0xff] }
   0x2   :  { %307 = vmatpush1.msra.mxu0 %v273_v1  ;;  %1419 = vmatpush1.msra.mxu1 %v273_v1  ;;  %v270_v4 = vld [vmem:[%s2379_s1 + $0x60] sm:$0xff]  ;;  %v269_v5 = vld [vmem:[%s2379_s1 + $0x58] sm:$0xff]  ;;  %v268_v6 = vld [vmem:[%s2379_s1 + $0x50] sm:$0xff] }
   0x3   :  { %308 = vmatprep.subr.mxu0 %v1452_v0  ;;  %1388 = vmatprep.subr.mxu1 %v1452_v0  ;;  %v267_v7 = vld [vmem:[%s2379_s1 + $0x48] sm:$0xff]  ;;  %v266_v8 = vld [vmem:[%s2379_s1 + $0x40] sm:$0xff]  ;;  %v265_v9 = vld [vmem:[%s2379_s1 + $0x38] sm:$0xff] }
   0x4   :  { %309 = vmatpush1.msra.mxu0 %v272_v2  ;;  %1420 = vmatpush1.msra.mxu1 %v272_v2  ;;  %v264_v10 = vld [vmem:[%s2379_s1 + $0x30] sm:$0xff]  ;;  %v263_v11 = vld [vmem:[%s2379_s1 + $0x28] sm:$0xff]  ;;  %v262_v12 = vld [vmem:[%s2379_s1 + $0x20] sm:$0xff] }
   0x5   :  { %310 = vmatprep.subr.mxu0 %v1452_v0  ;;  %1389 = vmatprep.subr.mxu1 %v1452_v0  ;;  %v261_v13 = vld [vmem:[%s2379_s1 + $0x18] sm:$0xff]  ;;  %v260_v14 = vld [vmem:[%s2379_s1 + $0x10] sm:$0xff]  ;;  %v259_v15 = vld [vmem:[%s2379_s1 + $0x8] sm:$0xff] }
   0x6   :  { %311 = vmatpush1.msra.mxu0 %v271_v3  ;;  %1421 = vmatpush1.msra.mxu1 %v271_v3  ;;  %v258_v16 = vld [vmem:[%s2379_s1] sm:$0xff]  ;;  %v289_v17 = vld [vmem:[%s2379_s1 + $0xf8] sm:$0xff]  ;;  %v288_v18 = vld [vmem:[%s2379_s1 + $0xf0] sm:$0xff] }
   0x7   :  { %312 = vmatprep.subr.mxu0 %v1452_v0  ;;  %1390 = vmatprep.subr.mxu1 %v1452_v0  ;;  %v287_v19 = vld [vmem:[%s2379_s1 + $0xe8] sm:$0xff]  ;;  %v286_v20 = vld [vmem:[%s2379_s1 + $0xe0] sm:$0xff]  ;;  %v285_v21 = vld [vmem:[%s2379_s1 + $0xd8] sm:$0xff] }
   0x8   :  { %313 = vmatpush1.msra.mxu0 %v270_v4  ;;  %1422 = vmatpush1.msra.mxu1 %v270_v4  ;;  %v284_v22 = vld [vmem:[%s2379_s1 + $0xd0] sm:$0xff]  ;;  %v283_v23 = vld [vmem:[%s2379_s1 + $0xc8] sm:$0xff]  ;;  %v282_v24 = vld [vmem:[%s2379_s1 + $0xc0] sm:$0xff] }
   0x9   :  { %314 = vmatprep.subr.mxu0 %v1452_v0  ;;  %1391 = vmatprep.subr.mxu1 %v1452_v0  ;;  %v281_v25 = vld [vmem:[%s2379_s1 + $0xb8] sm:$0xff]  ;;  %v280_v26 = vld [vmem:[%s2379_s1 + $0xb0] sm:$0xff]  ;;  %v279_v27 = vld [vmem:[%s2379_s1 + $0xa8] sm:$0xff] }
   0xa   :  { %315 = vmatpush1.msra.mxu0 %v269_v5  ;;  %1423 = vmatpush1.msra.mxu1 %v269_v5  ;;  %v278_v28 = vld [vmem:[%s2379_s1 + $0xa0] sm:$0xff]  ;;  %v277_v29 = vld [vmem:[%s2379_s1 + $0x98] sm:$0xff]  ;;  %v276_v30 = vld [vmem:[%s2379_s1 + $0x90] sm:$0xff] }
   0xb   :  { %316 = vmatprep.subr.mxu0 %v1452_v0  ;;  %1392 = vmatprep.subr.mxu1 %v1452_v0  ;;  %v275_v31 = vld [vmem:[%s2379_s1 + $0x88] sm:$0xff]  ;;  %v274_v32 = vld [vmem:[%s2379_s1 + $0x80] sm:$0xff]  ;;  %v305_v37 = vld [vmem:[%s2379_s1 + $0x178] sm:$0xff] }
   0xc   :  { %317 = vmatpush1.msra.mxu0 %v268_v6  ;;  %1424 = vmatpush1.msra.mxu1 %v268_v6  ;;  %v115_v33 = vld [vmem:[%s2380_s0 + $0x8] sm:$0xff]  ;;  %v114_v35 = vld [vmem:[%s2380_s0] sm:$0xff]  ;;  %v304_v40 = vld [vmem:[%s2379_s1 + $0x170] sm:$0xff] }
   0xd   :  { %318 = vmatprep.subr.mxu0 %v1452_v0  ;;  %1393 = vmatprep.subr.mxu1 %v1452_v0  ;;  %v223_v34 = vld [vmem:[%s2380_s0 + $0x368] sm:$0xff]  ;;  %v222_v36 = vld [vmem:[%s2380_s0 + $0x360] sm:$0xff]  ;;  %v117_v41 = vld [vmem:[%s2380_s0 + $0x18] sm:$0xff] }
   0xe   :  { %319 = vmatpush1.msra.mxu0 %v267_v7  ;;  %1425 = vmatpush1.msra.mxu1 %v267_v7  ;;  %v118_v38 = vld [vmem:[%s2380_s0 + $0x20] sm:$0xff]  ;;  %v225_v42 = vld [vmem:[%s2380_s0 + $0x378] sm:$0xff]  ;;  %v303_v44 = vld [vmem:[%s2379_s1 + $0x168] sm:$0xff] }
   0xf   :  { %320 = vmatprep.subr.mxu0 %v1452_v0  ;;  %1394 = vmatprep.subr.mxu1 %v1452_v0  ;;  %v226_v39 = vld [vmem:[%s2380_s0 + $0x380] sm:$0xff]  ;;  %v121_v43 = vld [vmem:[%s2380_s0 + $0x38] sm:$0xff]  ;;  %v120_v46 = vld [vmem:[%s2380_s0 + $0x30] sm:$0xff] }
  0x10   :  { %321 = vmatpush1.msra.mxu0 %v266_v8  ;;  %1426 = vmatpush1.msra.mxu1 %v266_v8  ;;  %v229_v45 = vld [vmem:[%s2380_s0 + $0x398] sm:$0xff]  ;;  %v228_v47 = vld [vmem:[%s2380_s0 + $0x390] sm:$0xff]  ;;  %v302_v48 = vld [vmem:[%s2379_s1 + $0x160] sm:$0xff] }
  0x11   :  { %322 = vmatprep.subr.mxu0 %v1452_v0  ;;  %1395 = vmatprep.subr.mxu1 %v1452_v0  ;;  %v124_v49 = vld [vmem:[%s2380_s0 + $0x50] sm:$0xff]  ;;  %v301_v51 = vld [vmem:[%s2379_s1 + $0x158] sm:$0xff]  ;;  %v123_v52 = vld [vmem:[%s2380_s0 + $0x48] sm:$0xff] }
  0x12   :  { %323 = vmatpush1.msra.mxu0 %v265_v9  ;;  %1427 = vmatpush1.msra.mxu1 %v265_v9  ;;  %v232_v50 = vld [vmem:[%s2380_s0 + $0x3b0] sm:$0xff]  ;;  %v231_v53 = vld [vmem:[%s2380_s0 + $0x3a8] sm:$0xff]  ;;  %v126_v57 = vld [vmem:[%s2380_s0 + $0x60] sm:$0xff] }
  0x13   :  { %324 = vmatprep.subr.mxu0 %v1452_v0  ;;  %1396 = vmatprep.subr.mxu1 %v1452_v0  ;;  %v127_v54 = vld [vmem:[%s2380_s0 + $0x68] sm:$0xff]  ;;  %v300_v56 = vld [vmem:[%s2379_s1 + $0x150] sm:$0xff]  ;;  %v234_v58 = vld [vmem:[%s2380_s0 + $0x3c0] sm:$0xff] }
  0x14   :  { %325 = vmatpush1.msra.mxu0 %v264_v10  ;;  %1428 = vmatpush1.msra.mxu1 %v264_v10  ;;  %v235_v55 = vld [vmem:[%s2380_s0 + $0x3c8] sm:$0xff]  ;;  %v130_v60 = vld [vmem:[%s2380_s0 + $0x80] sm:$0xff]  ;;  %v129_v63 = vld [vmem:[%s2380_s0 + $0x78] sm:$0xff] }
  0x15   :  { %326 = vmatprep.subr.mxu0 %v1452_v0  ;;  %1397 = vmatprep.subr.mxu1 %v1452_v0  ;;  %v299_v59 = vld [vmem:[%s2379_s1 + $0x148] sm:$0xff]  ;;  %v238_v61 = vld [vmem:[%s2380_s0 + $0x3e0] sm:$0xff]  ;;  %v133_v1 = vld [vmem:[%s2380_s0 + $0x98] sm:$0xff] }
  0x16   :  { %327 = vmatpush1.msra.mxu0 %v263_v11  ;;  %1429 = vmatpush1.msra.mxu1 %v263_v11  ;;  %v298_v62 = vld [vmem:[%s2379_s1 + $0x140] sm:$0xff]  ;;  %v241_v2 = vld [vmem:[%s2380_s0 + $0x3f8] sm:$0xff]  ;;  %v132_v4 = vld [vmem:[%s2380_s0 + $0x90] sm:$0xff] }
  0x17   :  { %328 = vmatprep.subr.mxu0 %v1452_v0  ;;  %1398 = vmatprep.subr.mxu1 %v1452_v0  ;;  %v297_v3 = vld [vmem:[%s2379_s1 + $0x138] sm:$0xff]  ;;  %v240_v5 = vld [vmem:[%s2380_s0 + $0x3f0] sm:$0xff]  ;;  %v135_v9 = vld [vmem:[%s2380_s0 + $0xa8] sm:$0xff] }
  0x18   :  { %329 = vmatpush1.msra.mxu0 %v262_v12  ;;  %1430 = vmatpush1.msra.mxu1 %v262_v12  ;;  %v136_v6 = vld [vmem:[%s2380_s0 + $0xb0] sm:$0xff]  ;;  %v243_v10 = vld [vmem:[%s2380_s0 + $0x408] sm:$0xff] }
  0x19   :  { %330 = vmatprep.subr.mxu0 %v1452_v0  ;;  %1399 = vmatprep.subr.mxu1 %v1452_v0  ;;  %v244_v7 = vld [vmem:[%s2380_s0 + $0x410] sm:$0xff]  ;;  %v295_v11 = vld [vmem:[%s2379_s1 + $0x128] sm:$0xff] }
  0x1a   :  { %331 = vmatpush1.msra.mxu0 %v261_v13  ;;  %1431 = vmatpush1.msra.mxu1 %v261_v13  ;;  %v296_v8 = vld [vmem:[%s2379_s1 + $0x130] sm:$0xff]  ;;  %v139_v12 = vld [vmem:[%s2380_s0 + $0xc8] sm:$0xff] }
  0x1b   :  { %332 = vmatprep.subr.mxu0 %v1452_v0  ;;  %1400 = vmatprep.subr.mxu1 %v1452_v0  ;;  %v247_v13 = vld [vmem:[%s2380_s0 + $0x428] sm:$0xff] }
  0x1c   :  { %333 = vmatpush1.msra.mxu0 %v260_v14  ;;  %1432 = vmatpush1.msra.mxu1 %v260_v14  ;;  %v294_v14 = vld [vmem:[%s2379_s1 + $0x120] sm:$0xff] }
  0x1d   :  { %334 = vmatprep.subr.mxu0 %v1452_v0  ;;  %1401 = vmatprep.subr.mxu1 %v1452_v0 }
  0x1e   :  { %335 = vmatpush1.msra.mxu0 %v259_v15  ;;  %1433 = vmatpush1.msra.mxu1 %v259_v15  ;;  %v138_v15 = vld [vmem:[%s2380_s0 + $0xc0] sm:$0xff] }
  0x1f   :  { %336 = vmatprep.subr.mxu0 %v1452_v0  ;;  %1402 = vmatprep.subr.mxu1 %v1452_v0 }
  0x20   :  { %337 = vmatpush1.msra.mxu0 %v258_v16  ;;  %1434 = vmatpush1.msra.mxu1 %v258_v16  ;;  %v246_v16 = vld [vmem:[%s2380_s0 + $0x420] sm:$0xff] }
  0x21   :  { %338 = vmatprep.subr.mxu0 %v1452_v0  ;;  %1403 = vmatprep.subr.mxu1 %v1452_v0 }
  0x22   :  { %339 = vmatpush2.msra.mxu0 %v289_v17  ;;  %1435 = vmatpush2.msra.mxu1 %v289_v17  ;;  %v142_v17 = vld [vmem:[%s2380_s0 + $0xe0] sm:$0xff] }
  0x23   :  { %340 = vmatprep.subr.mxu0 %v1452_v0  ;;  %1404 = vmatprep.subr.mxu1 %v1452_v0 }
  0x24   :  { %341 = vmatpush2.msra.mxu0 %v288_v18  ;;  %1436 = vmatpush2.msra.mxu1 %v288_v18  ;;  %v250_v18 = vld [vmem:[%s2380_s0 + $0x440] sm:$0xff] }
  0x25   :  { %342 = vmatprep.subr.mxu0 %v1452_v0  ;;  %1405 = vmatprep.subr.mxu1 %v1452_v0 }
  0x26   :  { %343 = vmatpush2.msra.mxu0 %v287_v19  ;;  %1437 = vmatpush2.msra.mxu1 %v287_v19  ;;  %v293_v19 = vld [vmem:[%s2379_s1 + $0x118] sm:$0xff] }
  0x27   :  { %344 = vmatprep.subr.mxu0 %v1452_v0  ;;  %1406 = vmatprep.subr.mxu1 %v1452_v0 }
  0x28   :  { %345 = vmatpush2.msra.mxu0 %v286_v20  ;;  %1438 = vmatpush2.msra.mxu1 %v286_v20  ;;  %v141_v20 = vld [vmem:[%s2380_s0 + $0xd8] sm:$0xff] }
  0x29   :  { %346 = vmatprep.subr.mxu0 %v1452_v0  ;;  %1407 = vmatprep.subr.mxu1 %v1452_v0 }
  0x2a   :  { %347 = vmatpush2.msra.mxu0 %v285_v21  ;;  %1439 = vmatpush2.msra.mxu1 %v285_v21  ;;  %v249_v21 = vld [vmem:[%s2380_s0 + $0x438] sm:$0xff] }
  0x2b   :  { %348 = vmatprep.subr.mxu0 %v1452_v0  ;;  %1408 = vmatprep.subr.mxu1 %v1452_v0 }
  0x2c   :  { %349 = vmatpush2.msra.mxu0 %v284_v22  ;;  %1440 = vmatpush2.msra.mxu1 %v284_v22  ;;  %v145_v22 = vld [vmem:[%s2380_s0 + $0xf8] sm:$0xff] }
  0x2d   :  { %350 = vmatprep.subr.mxu0 %v1452_v0  ;;  %1409 = vmatprep.subr.mxu1 %v1452_v0 }
  0x2e   :  { %351 = vmatpush2.msra.mxu0 %v283_v23  ;;  %1441 = vmatpush2.msra.mxu1 %v283_v23  ;;  %v253_v23 = vld [vmem:[%s2380_s0 + $0x458] sm:$0xff] }
  0x2f   :  { %352 = vmatprep.subr.mxu0 %v1452_v0  ;;  %1410 = vmatprep.subr.mxu1 %v1452_v0 }
  0x30   :  { %353 = vmatpush2.msra.mxu0 %v282_v24  ;;  %1442 = vmatpush2.msra.mxu1 %v282_v24  ;;  %v292_v24 = vld [vmem:[%s2379_s1 + $0x110] sm:$0xff] }
  0x31   :  { %354 = vmatprep.subr.mxu0 %v1452_v0  ;;  %1411 = vmatprep.subr.mxu1 %v1452_v0 }
  0x32   :  { %355 = vmatpush2.msra.mxu0 %v281_v25  ;;  %1443 = vmatpush2.msra.mxu1 %v281_v25  ;;  %v144_v25 = vld [vmem:[%s2380_s0 + $0xf0] sm:$0xff] }
  0x33   :  { %356 = vmatprep.subr.mxu0 %v1452_v0  ;;  %1412 = vmatprep.subr.mxu1 %v1452_v0 }
  0x34   :  { %357 = vmatpush2.msra.mxu0 %v280_v26  ;;  %1444 = vmatpush2.msra.mxu1 %v280_v26  ;;  %v252_v26 = vld [vmem:[%s2380_s0 + $0x450] sm:$0xff] }
  0x35   :  { %358 = vmatprep.subr.mxu0 %v1452_v0  ;;  %1413 = vmatprep.subr.mxu1 %v1452_v0 }
  0x36   :  { %359 = vmatpush2.msra.mxu0 %v279_v27  ;;  %1445 = vmatpush2.msra.mxu1 %v279_v27  ;;  %v291_v27 = vld [vmem:[%s2379_s1 + $0x108] sm:$0xff] }
  0x37   :  { %360 = vmatprep.subr.mxu0 %v1452_v0  ;;  %1414 = vmatprep.subr.mxu1 %v1452_v0 }
  0x38   :  { %361 = vmatpush2.msra.mxu0 %v278_v28  ;;  %1446 = vmatpush2.msra.mxu1 %v278_v28  ;;  %v148_v28 = vld [vmem:[%s2380_s0 + $0x110] sm:$0xff] }
  0x39   :  { %362 = vmatprep.subr.mxu0 %v1452_v0  ;;  %1415 = vmatprep.subr.mxu1 %v1452_v0 }
  0x3a   :  { %363 = vmatpush2.msra.mxu0 %v277_v29  ;;  %1447 = vmatpush2.msra.mxu1 %v277_v29  ;;  %v256_v29 = vld [vmem:[%s2380_s0 + $0x470] sm:$0xff] }
  0x3b   :  { %364 = vmatprep.subr.mxu0 %v1452_v0  ;;  %1416 = vmatprep.subr.mxu1 %v1452_v0 }
  0x3c   :  { %365 = vmatpush2.msra.mxu0 %v276_v30  ;;  %1448 = vmatpush2.msra.mxu1 %v276_v30  ;;  %v290_v30 = vld [vmem:[%s2379_s1 + $0x100] sm:$0xff] }
  0x3d   :  { %366 = vmatprep.subr.mxu0 %v1452_v0  ;;  %1417 = vmatprep.subr.mxu1 %v1452_v0 }
  0x3e   :  { %367 = vmatpush2.msra.mxu0 %v275_v31  ;;  %1449 = vmatpush2.msra.mxu1 %v275_v31  ;;  %v147_v31 = vld [vmem:[%s2380_s0 + $0x108] sm:$0xff] }
  0x3f   :  { %368 = vmatprep.subr.mxu0 %v1452_v0  ;;  %1418 = vmatprep.subr.mxu1 %v1452_v0  ;;  %v237_v0 = vld [vmem:[%s2380_s0 + $0x3d8] sm:$0xff] }
  0x40   :  { %369 = vmatpush2.msra.mxu0 %v274_v32  ;;  %1450 = vmatpush2.msra.mxu1 %v274_v32  ;;  %v255_v32 = vld [vmem:[%s2380_s0 + $0x468] sm:$0xff] }
  0x41   :  { %370 = vmatprep.mubr.f32.mxu0 %v115_v33  ;;  %550 = vmatprep.mubr.f32.mxu1 %v223_v34  ;;  %v151_v33 = vld [vmem:[%s2380_s0 + $0x128] sm:$0xff]  ;;  %v116_v34 = vld [vmem:[%s2380_s0 + $0x10] sm:$0xff] }
  0x42   :  { %371 = vmatmul.mubr.f32.vlgmr.msra.gmra.mxu0 %v114_v35  ;;  %551 = vmatmul.mubr.f32.vlgmr.msra.gmra.mxu1 %v222_v36  ;;  %v150_v35 = vld [vmem:[%s2380_s0 + $0x120] sm:$0xff]  ;;  %v119_v36 = vld [vmem:[%s2380_s0 + $0x28] sm:$0xff] }
  0x43   :  { %1283 = vmatprep.subr.mxu1 %v305_v37  ;;  %375 = vmatprep.mubr.f32.mxu0 %v118_v38  ;;  %v122_v38 = vld [vmem:[%s2380_s0 + $0x40] sm:$0xff] }
  0x44   :  { %1284 = vmatpush3.msra.mxu1 %v305_v37  ;;  %555 = vmatprep.mubr.f32.mxu1 %v226_v39  ;;  %v154_v37 = vld [vmem:[%s2380_s0 + $0x140] sm:$0xff]  ;;  %v153_v39 = vld [vmem:[%s2380_s0 + $0x138] sm:$0xff] }
  0x45   :  { %1285 = vmatprep.subr.mxu1 %v304_v40 }
  0x46   :  { %376 = vmatmul.mubr.f32.gmra.mxu0 %v117_v41  ;;  %556 = vmatmul.mubr.f32.gmra.mxu1 %v225_v42  ;;  %v157_v41 = vld [vmem:[%s2380_s0 + $0x158] sm:$0xff]  ;;  %v128_v42 = vld [vmem:[%s2380_s0 + $0x70] sm:$0xff] }
  0x47   :  { %1286 = vmatpush3.msra.mxu1 %v304_v40  ;;  %380 = vmatprep.mubr.f32.mxu0 %v121_v43  ;;  %v125_v40 = vld [vmem:[%s2380_s0 + $0x58] sm:$0xff]  ;;  %v156_v43 = vld [vmem:[%s2380_s0 + $0x150] sm:$0xff] }
  0x48   :  { %1287 = vmatprep.subr.mxu1 %v303_v44  ;;  %560 = vmatprep.mubr.f32.mxu1 %v229_v45  ;;  %v160_v45 = vld [vmem:[%s2380_s0 + $0x170] sm:$0xff] }
  0x49   :  { %1288 = vmatpush3.msra.mxu1 %v303_v44  ;;  %v131_v44 = vld [vmem:[%s2380_s0 + $0x88] sm:$0xff] }
  0x4a   :  { %381 = vmatmul.mubr.f32.gmra.mxu0 %v120_v46  ;;  %561 = vmatmul.mubr.f32.gmra.mxu1 %v228_v47  ;;  %v134_v46 = vld [vmem:[%s2380_s0 + $0xa0] sm:$0xff]  ;;  %v159_v47 = vld [vmem:[%s2380_s0 + $0x168] sm:$0xff] }
  0x4b   :  { %1289 = vmatprep.subr.mxu1 %v302_v48  ;;  %385 = vmatprep.mubr.f32.mxu0 %v124_v49  ;;  %v163_v49 = vld [vmem:[%s2380_s0 + $0x188] sm:$0xff] }
  0x4c   :  { %1290 = vmatpush3.msra.mxu1 %v302_v48  ;;  %565 = vmatprep.mubr.f32.mxu1 %v232_v50  ;;  %v137_v48 = vld [vmem:[%s2380_s0 + $0xb8] sm:$0xff]  ;;  %v140_v50 = vld [vmem:[%s2380_s0 + $0xd0] sm:$0xff] }
  0x4d   :  { %1291 = vmatprep.subr.mxu1 %v301_v51 }
  0x4e   :  { %386 = vmatmul.mubr.f32.gmra.mxu0 %v123_v52  ;;  %566 = vmatmul.mubr.f32.gmra.mxu1 %v231_v53  ;;  %v143_v52 = vld [vmem:[%s2380_s0 + $0xe8] sm:$0xff]  ;;  %v166_v53 = vld [vmem:[%s2380_s0 + $0x1a0] sm:$0xff] }
  0x4f   :  { %1292 = vmatpush3.msra.mxu1 %v301_v51  ;;  %390 = vmatprep.mubr.f32.mxu0 %v127_v54  ;;  %v162_v51 = vld [vmem:[%s2380_s0 + $0x180] sm:$0xff] }
  0x50   :  { %570 = vmatprep.mubr.f32.mxu1 %v235_v55  ;;  %1293 = vmatprep.subr.mxu1 %v300_v56  ;;  %v146_v54 = vld [vmem:[%s2380_s0 + $0x100] sm:$0xff]  ;;  %v165_v55 = vld [vmem:[%s2380_s0 + $0x198] sm:$0xff] }
  0x51   :  { %1294 = vmatpush3.msra.mxu1 %v300_v56  ;;  %v149_v56 = vld [vmem:[%s2380_s0 + $0x118] sm:$0xff] }
  0x52   :  { %391 = vmatmul.mubr.f32.gmra.mxu0 %v126_v57  ;;  %571 = vmatmul.mubr.f32.gmra.mxu1 %v234_v58  ;;  %v169_v57 = vld [vmem:[%s2380_s0 + $0x1b8] sm:$0xff]  ;;  %v152_v58 = vld [vmem:[%s2380_s0 + $0x130] sm:$0xff] }
  0x53   :  { %1295 = vmatprep.subr.mxu1 %v299_v59  ;;  %395 = vmatprep.mubr.f32.mxu0 %v130_v60  ;;  %v155_v60 = vld [vmem:[%s2380_s0 + $0x148] sm:$0xff] }
  0x54   :  { %575 = vmatprep.mubr.f32.mxu1 %v238_v61  ;;  %1296 = vmatpush3.msra.mxu1 %v299_v59  ;;  %v168_v59 = vld [vmem:[%s2380_s0 + $0x1b0] sm:$0xff] }
  0x55   :  { %1297 = vmatprep.subr.mxu1 %v298_v62  ;;  %v172_v61 = vld [vmem:[%s2380_s0 + $0x1d0] sm:$0xff] }
  0x56   :  { %396 = vmatmul.mubr.f32.gmra.mxu0 %v129_v63  ;;  %576 = vmatmul.mubr.f32.gmra.mxu1 %v237_v0  ;;  %v171_v63 = vld [vmem:[%s2380_s0 + $0x1c8] sm:$0xff]  ;;  %v161_v0 = vld [vmem:[%s2380_s0 + $0x178] sm:$0xff] }
  0x57   :  { %1298 = vmatpush3.msra.mxu1 %v298_v62  ;;  %400 = vmatprep.mubr.f32.mxu0 %v133_v1  ;;  %v158_v62 = vld [vmem:[%s2380_s0 + $0x160] sm:$0xff]  ;;  %v175_v1 = vld [vmem:[%s2380_s0 + $0x1e8] sm:$0xff] }
  0x58   :  { %580 = vmatprep.mubr.f32.mxu1 %v241_v2  ;;  %1299 = vmatprep.subr.mxu1 %v297_v3  ;;  %v164_v2 = vld [vmem:[%s2380_s0 + $0x190] sm:$0xff] }
  0x59   :  { %1300 = vmatpush3.msra.mxu1 %v297_v3  ;;  %v174_v3 = vld [vmem:[%s2380_s0 + $0x1e0] sm:$0xff] }
  0x5a   :  { %401 = vmatmul.mubr.f32.gmra.mxu0 %v132_v4  ;;  %581 = vmatmul.mubr.f32.gmra.mxu1 %v240_v5  ;;  %v167_v4 = vld [vmem:[%s2380_s0 + $0x1a8] sm:$0xff]  ;;  %v178_v5 = vld [vmem:[%s2380_s0 + $0x200] sm:$0xff] }
  0x5b   :  { %405 = vmatprep.mubr.f32.mxu0 %v136_v6  ;;  %585 = vmatprep.mubr.f32.mxu1 %v244_v7  ;;  %v170_v6 = vld [vmem:[%s2380_s0 + $0x1c0] sm:$0xff]  ;;  %v177_v7 = vld [vmem:[%s2380_s0 + $0x1f8] sm:$0xff] }
  0x5c   :  { %1301 = vmatprep.subr.mxu1 %v296_v8 }
  0x5d   :  { %1302 = vmatpush3.msra.mxu1 %v296_v8  ;;  %v173_v8 = vld [vmem:[%s2380_s0 + $0x1d8] sm:$0xff] }
  0x5e   :  { %406 = vmatmul.mubr.f32.gmra.mxu0 %v135_v9  ;;  %586 = vmatmul.mubr.f32.gmra.mxu1 %v243_v10  ;;  %v181_v9 = vld [vmem:[%s2380_s0 + $0x218] sm:$0xff]  ;;  %v176_v10 = vld [vmem:[%s2380_s0 + $0x1f0] sm:$0xff] }
  0x5f   :  { %1303 = vmatprep.subr.mxu1 %v295_v11  ;;  %410 = vmatprep.mubr.f32.mxu0 %v139_v12  ;;  %v179_v12 = vld [vmem:[%s2380_s0 + $0x208] sm:$0xff] }
  0x60   :  { %590 = vmatprep.mubr.f32.mxu1 %v247_v13  ;;  %1304 = vmatpush3.msra.mxu1 %v295_v11  ;;  %v180_v11 = vld [vmem:[%s2380_s0 + $0x210] sm:$0xff] }
  0x61   :  { %1305 = vmatprep.subr.mxu1 %v294_v14  ;;  %v184_v13 = vld [vmem:[%s2380_s0 + $0x230] sm:$0xff] }
  0x62   :  { %411 = vmatmul.mubr.f32.gmra.mxu0 %v138_v15  ;;  %591 = vmatmul.mubr.f32.gmra.mxu1 %v246_v16  ;;  %v183_v15 = vld [vmem:[%s2380_s0 + $0x228] sm:$0xff]  ;;  %v185_v16 = vld [vmem:[%s2380_s0 + $0x238] sm:$0xff] }
  0x63   :  { %1306 = vmatpush3.msra.mxu1 %v294_v14  ;;  %415 = vmatprep.mubr.f32.mxu0 %v142_v17  ;;  %v182_v14 = vld [vmem:[%s2380_s0 + $0x220] sm:$0xff]  ;;  %v187_v17 = vld [vmem:[%s2380_s0 + $0x248] sm:$0xff] }
  0x64   :  { %595 = vmatprep.mubr.f32.mxu1 %v250_v18  ;;  %1307 = vmatprep.subr.mxu1 %v293_v19  ;;  %v188_v18 = vld [vmem:[%s2380_s0 + $0x250] sm:$0xff] }
  0x65   :  { %1308 = vmatpush3.msra.mxu1 %v293_v19  ;;  %v186_v19 = vld [vmem:[%s2380_s0 + $0x240] sm:$0xff] }
  0x66   :  { %416 = vmatmul.mubr.f32.gmra.mxu0 %v141_v20  ;;  %596 = vmatmul.mubr.f32.gmra.mxu1 %v249_v21  ;;  %v191_v20 = vld [vmem:[%s2380_s0 + $0x268] sm:$0xff]  ;;  %v190_v21 = vld [vmem:[%s2380_s0 + $0x260] sm:$0xff] }
  0x67   :  { %420 = vmatprep.mubr.f32.mxu0 %v145_v22  ;;  %600 = vmatprep.mubr.f32.mxu1 %v253_v23  ;;  %v194_v22 = vld [vmem:[%s2380_s0 + $0x280] sm:$0xff]  ;;  %v189_v23 = vld [vmem:[%s2380_s0 + $0x258] sm:$0xff] }
  0x68   :  { %1309 = vmatprep.subr.mxu1 %v292_v24 }
  0x69   :  { %1310 = vmatpush3.msra.mxu1 %v292_v24  ;;  %v197_v24 = vld [vmem:[%s2380_s0 + $0x298] sm:$0xff] }
  0x6a   :  { %421 = vmatmul.mubr.f32.gmra.mxu0 %v144_v25  ;;  %601 = vmatmul.mubr.f32.gmra.mxu1 %v252_v26  ;;  %v193_v25 = vld [vmem:[%s2380_s0 + $0x278] sm:$0xff]  ;;  %v200_v26 = vld [vmem:[%s2380_s0 + $0x2b0] sm:$0xff] }
  0x6b   :  { %1311 = vmatprep.subr.mxu1 %v291_v27  ;;  %425 = vmatprep.mubr.f32.mxu0 %v148_v28  ;;  %v203_v28 = vld [vmem:[%s2380_s0 + $0x2c8] sm:$0xff] }
  0x6c   :  { %605 = vmatprep.mubr.f32.mxu1 %v256_v29  ;;  %1312 = vmatpush3.msra.mxu1 %v291_v27  ;;  %v192_v27 = vld [vmem:[%s2380_s0 + $0x270] sm:$0xff] }
  0x6d   :  { %1313 = vmatprep.subr.mxu1 %v290_v30  ;;  %v196_v29 = vld [vmem:[%s2380_s0 + $0x290] sm:$0xff] }
  0x6e   :  { %426 = vmatmul.mubr.f32.gmra.mxu0 %v147_v31  ;;  %606 = vmatmul.mubr.f32.gmra.mxu1 %v255_v32  ;;  %v195_v31 = vld [vmem:[%s2380_s0 + $0x288] sm:$0xff]  ;;  %v209_v32 = vld [vmem:[%s2380_s0 + $0x2f8] sm:$0xff] }
  0x6f   :  { %1314 = vmatpush3.msra.mxu1 %v290_v30  ;;  %430 = vmatprep.mubr.f32.mxu0 %v151_v33  ;;  %v206_v30 = vld [vmem:[%s2380_s0 + $0x2e0] sm:$0xff]  ;;  %v199_v33 = vld [vmem:[%s2380_s0 + $0x2a8] sm:$0xff] }
  0x70   :  { %1315 = vmatprep.mubr.f32.mxu1 %v116_v34  ;;  %v212_v34 = vld [vmem:[%s2380_s0 + $0x310] sm:$0xff] }
  0x72   :  { %431 = vmatmul.mubr.f32.gmra.mxu0 %v150_v35  ;;  %1316 = vmatmul.mubr.f32.vlgmr.msra.gmra.mxu1 %v119_v36  ;;  %v198_v35 = vld [vmem:[%s2380_s0 + $0x2a0] sm:$0xff]  ;;  %v215_v36 = vld [vmem:[%s2380_s0 + $0x328] sm:$0xff] }
  0x73   :  { %435 = vmatprep.mubr.f32.mxu0 %v154_v37  ;;  %1318 = vmatprep.mubr.f32.mxu1 %v122_v38  ;;  %v202_v37 = vld [vmem:[%s2380_s0 + $0x2c0] sm:$0xff] }
  0x74   :  { %v218_v38 = vld [vmem:[%s2380_s0 + $0x340] sm:$0xff] }
  0x76   :  { %436 = vmatmul.mubr.f32.gmra.mxu0 %v153_v39  ;;  %1319 = vmatmul.mubr.f32.gmra.mxu1 %v125_v40  ;;  %v201_v39 = vld [vmem:[%s2380_s0 + $0x2b8] sm:$0xff] }
  0x77   :  { %440 = vmatprep.mubr.f32.mxu0 %v157_v41  ;;  %1321 = vmatprep.mubr.f32.mxu1 %v128_v42  ;;  %v221_v40 = vld [vmem:[%s2380_s0 + $0x358] sm:$0xff]  ;;  %v224_v42 = vld [vmem:[%s2380_s0 + $0x370] sm:$0xff] }
  0x78   :  { %v205_v41 = vld [vmem:[%s2380_s0 + $0x2d8] sm:$0xff] }
  0x7a   :  { %441 = vmatmul.mubr.f32.gmra.mxu0 %v156_v43  ;;  %1322 = vmatmul.mubr.f32.gmra.mxu1 %v131_v44  ;;  %v204_v43 = vld [vmem:[%s2380_s0 + $0x2d0] sm:$0xff]  ;;  %v227_v44 = vld [vmem:[%s2380_s0 + $0x388] sm:$0xff] }
  0x7b   :  { %445 = vmatprep.mubr.f32.mxu0 %v160_v45  ;;  %1324 = vmatprep.mubr.f32.mxu1 %v134_v46  ;;  %v208_v45 = vld [vmem:[%s2380_s0 + $0x2f0] sm:$0xff]  ;;  %v230_v46 = vld [vmem:[%s2380_s0 + $0x3a0] sm:$0xff] }
  0x7e   :  { %446 = vmatmul.mubr.f32.gmra.mxu0 %v159_v47  ;;  %1325 = vmatmul.mubr.f32.gmra.mxu1 %v137_v48  ;;  %v207_v47 = vld [vmem:[%s2380_s0 + $0x2e8] sm:$0xff]  ;;  %v233_v48 = vld [vmem:[%s2380_s0 + $0x3b8] sm:$0xff] }
  0x7f   :  { %450 = vmatprep.mubr.f32.mxu0 %v163_v49  ;;  %1327 = vmatprep.mubr.f32.mxu1 %v140_v50  ;;  %v211_v49 = vld [vmem:[%s2380_s0 + $0x308] sm:$0xff]  ;;  %v236_v50 = vld [vmem:[%s2380_s0 + $0x3d0] sm:$0xff] }
  0x82   :  { %451 = vmatmul.mubr.f32.gmra.mxu0 %v162_v51  ;;  %1328 = vmatmul.mubr.f32.gmra.mxu1 %v143_v52  ;;  %v210_v51 = vld [vmem:[%s2380_s0 + $0x300] sm:$0xff]  ;;  %v239_v52 = vld [vmem:[%s2380_s0 + $0x3e8] sm:$0xff] }
  0x83   :  { %455 = vmatprep.mubr.f32.mxu0 %v166_v53  ;;  %1330 = vmatprep.mubr.f32.mxu1 %v146_v54  ;;  %v214_v53 = vld [vmem:[%s2380_s0 + $0x320] sm:$0xff] }
  0x84   :  { %v242_v54 = vld [vmem:[%s2380_s0 + $0x400] sm:$0xff] }
  0x86   :  { %456 = vmatmul.mubr.f32.gmra.mxu0 %v165_v55  ;;  %1331 = vmatmul.mubr.f32.gmra.mxu1 %v149_v56  ;;  %v213_v55 = vld [vmem:[%s2380_s0 + $0x318] sm:$0xff] }
  0x87   :  { %460 = vmatprep.mubr.f32.mxu0 %v169_v57  ;;  %1333 = vmatprep.mubr.f32.mxu1 %v152_v58  ;;  %v245_v56 = vld [vmem:[%s2380_s0 + $0x418] sm:$0xff]  ;;  %v248_v58 = vld [vmem:[%s2380_s0 + $0x430] sm:$0xff] }
  0x88   :  { %v217_v57 = vld [vmem:[%s2380_s0 + $0x338] sm:$0xff] }
  0x8a   :  { %461 = vmatmul.mubr.f32.gmra.mxu0 %v168_v59  ;;  %1334 = vmatmul.mubr.f32.gmra.mxu1 %v155_v60  ;;  %v216_v59 = vld [vmem:[%s2380_s0 + $0x330] sm:$0xff]  ;;  %v251_v60 = vld [vmem:[%s2380_s0 + $0x448] sm:$0xff] }
  0x8b   :  { %465 = vmatprep.mubr.f32.mxu0 %v172_v61  ;;  %1336 = vmatprep.mubr.f32.mxu1 %v158_v62  ;;  %v220_v61 = vld [vmem:[%s2380_s0 + $0x350] sm:$0xff]  ;;  %v254_v62 = vld [vmem:[%s2380_s0 + $0x460] sm:$0xff] }
  0x8e   :  { %466 = vmatmul.mubr.f32.gmra.mxu0 %v171_v63  ;;  %1337 = vmatmul.mubr.f32.gmra.mxu1 %v161_v0  ;;  %v219_v63 = vld [vmem:[%s2380_s0 + $0x348] sm:$0xff]  ;;  %v257_v0 = vld [vmem:[%s2380_s0 + $0x478] sm:$0xff] }
  0x8f   :  { %470 = vmatprep.mubr.f32.mxu0 %v175_v1  ;;  %1339 = vmatprep.mubr.f32.mxu1 %v164_v2 }
  0x92   :  { %471 = vmatmul.mubr.f32.gmra.mxu0 %v174_v3  ;;  %1340 = vmatmul.mubr.f32.gmra.mxu1 %v167_v4 }
  0x93   :  { %475 = vmatprep.mubr.f32.mxu0 %v178_v5  ;;  %1342 = vmatprep.mubr.f32.mxu1 %v170_v6 }
  0x96   :  { %476 = vmatmul.mubr.f32.gmra.mxu0 %v177_v7  ;;  %1343 = vmatmul.mubr.f32.gmra.mxu1 %v173_v8 }
  0x97   :  { %480 = vmatprep.mubr.f32.mxu0 %v181_v9  ;;  %1345 = vmatprep.mubr.f32.mxu1 %v176_v10 }
  0x9a   :  { %481 = vmatmul.mubr.f32.gmra.mxu0 %v180_v11  ;;  %1346 = vmatmul.mubr.f32.gmra.mxu1 %v179_v12 }
  0x9b   :  { %485 = vmatprep.mubr.f32.mxu0 %v184_v13  ;;  %1348 = vmatprep.mubr.f32.mxu1 %v182_v14 }
  0x9e   :  { %486 = vmatmul.mubr.f32.gmra.mxu0 %v183_v15  ;;  %1349 = vmatmul.mubr.f32.gmra.mxu1 %v185_v16 }
  0x9f   :  { %490 = vmatprep.mubr.f32.mxu0 %v187_v17  ;;  %1351 = vmatprep.mubr.f32.mxu1 %v188_v18 }
  0xa2   :  { %491 = vmatmul.mubr.f32.gmra.mxu0 %v186_v19  ;;  %1352 = vmatmul.mubr.f32.gmra.mxu1 %v191_v20 }
  0xa3   :  { %495 = vmatprep.mubr.f32.mxu0 %v190_v21  ;;  %1354 = vmatprep.mubr.f32.mxu1 %v194_v22 }
  0xa6   :  { %496 = vmatmul.mubr.f32.gmra.mxu0 %v189_v23  ;;  %1355 = vmatmul.mubr.f32.gmra.mxu1 %v197_v24 }
  0xa7   :  { %500 = vmatprep.mubr.f32.mxu0 %v193_v25  ;;  %1357 = vmatprep.mubr.f32.mxu1 %v200_v26 }
  0xaa   :  { %501 = vmatmul.mubr.f32.gmra.mxu0 %v192_v27  ;;  %1358 = vmatmul.mubr.f32.gmra.mxu1 %v203_v28 }
  0xab   :  { %505 = vmatprep.mubr.f32.mxu0 %v196_v29  ;;  %1360 = vmatprep.mubr.f32.mxu1 %v206_v30 }
  0xae   :  { %506 = vmatmul.mubr.f32.gmra.mxu0 %v195_v31  ;;  %1361 = vmatmul.mubr.f32.gmra.mxu1 %v209_v32 }
  0xaf   :  { %510 = vmatprep.mubr.f32.mxu0 %v199_v33  ;;  %1363 = vmatprep.mubr.f32.mxu1 %v212_v34 }
  0xb2   :  { %511 = vmatmul.mubr.f32.gmra.mxu0 %v198_v35  ;;  %1364 = vmatmul.mubr.f32.gmra.mxu1 %v215_v36 }
  0xb3   :  { %515 = vmatprep.mubr.f32.mxu0 %v202_v37  ;;  %1366 = vmatprep.mubr.f32.mxu1 %v218_v38 }
  0xb6   :  { %516 = vmatmul.mubr.f32.gmra.mxu0 %v201_v39  ;;  %1367 = vmatmul.mubr.f32.gmra.mxu1 %v221_v40 }
  0xb7   :  { %520 = vmatprep.mubr.f32.mxu0 %v205_v41  ;;  %1369 = vmatprep.mubr.f32.mxu1 %v224_v42 }
  0xba   :  { %521 = vmatmul.mubr.f32.gmra.mxu0 %v204_v43  ;;  %1370 = vmatmul.mubr.f32.gmra.mxu1 %v227_v44 }
  0xbb   :  { %525 = vmatprep.mubr.f32.mxu0 %v208_v45  ;;  %1372 = vmatprep.mubr.f32.mxu1 %v230_v46 }
  0xbe   :  { %526 = vmatmul.mubr.f32.gmra.mxu0 %v207_v47  ;;  %1373 = vmatmul.mubr.f32.gmra.mxu1 %v233_v48 }
  0xbf   :  { %530 = vmatprep.mubr.f32.mxu0 %v211_v49  ;;  %1375 = vmatprep.mubr.f32.mxu1 %v236_v50 }
  0xc2   :  { %531 = vmatmul.mubr.f32.gmra.mxu0 %v210_v51  ;;  %1376 = vmatmul.mubr.f32.gmra.mxu1 %v239_v52  ;;  %v2152_v51 = vld [vmem:[%s2381_s2] ss:$0 sm:$0xff] }
  0xc3   :  { %535 = vmatprep.mubr.f32.mxu0 %v214_v53  ;;  %1378 = vmatprep.mubr.f32.mxu1 %v242_v54 }
  0xc6   :  { %536 = vmatmul.mubr.f32.gmra.mxu0 %v213_v55  ;;  %1379 = vmatmul.mubr.f32.gmra.mxu1 %v245_v56 }
  0xc7   :  { %540 = vmatprep.mubr.f32.mxu0 %v217_v57  ;;  %1381 = vmatprep.mubr.f32.mxu1 %v248_v58 }
  0xca   :  { %541 = vmatmul.mubr.f32.gmra.mxu0 %v216_v59  ;;  %1382 = vmatmul.mubr.f32.gmra.mxu1 %v251_v60 }
  0xcb   :  { %545 = vmatprep.mubr.f32.mxu0 %v220_v61  ;;  %1384 = vmatprep.mubr.f32.mxu1 %v254_v62 }
  0xce   :  { %546 = vmatmul.mubr.f32.gmra.mxu0 %v219_v63  ;;  %1385 = vmatmul.mubr.f32.gmra.mxu1 %v257_v0 }
 0x102   :  { %v372_v1 = vpop.f32.mrf.mxu0  ;;  %v2113_v2 = vpop.f32.mrf.mxu1 }
 0x104   :  { %v374_v3 = vpop.f32.mrf.mxu0  ;;  %v554_v4 = vpop.f32.mrf.mxu1 }
 0x106   :  { %v377_v5 = vpop.f32.mrf.mxu0  ;;  %v2115_v6 = vpop.f32.mrf.mxu1 }
 0x108   :  { %v379_v7 = vpop.f32.mrf.mxu0  ;;  %v559_v8 = vpop.f32.mrf.mxu1 }
 0x10a   :  { %v382_v9 = vpop.f32.mrf.mxu0  ;;  %v2117_v10 = vpop.f32.mrf.mxu1 }
 0x10c   :  { %v384_v11 = vpop.f32.mrf.mxu0  ;;  %v564_v12 = vpop.f32.mrf.mxu1 }
 0x10e   :  { %v387_v13 = vpop.f32.mrf.mxu0  ;;  %v2119_v14 = vpop.f32.mrf.mxu1 }
 0x110   :  { %v389_v15 = vpop.f32.mrf.mxu0  ;;  %v569_v16 = vpop.f32.mrf.mxu1 }
 0x112   :  { %v2121_v17 = vpop.f32.mrf.mxu0  ;;  %v2123_v18 = vpop.f32.mrf.mxu1 }
 0x114   :  { %v394_v19 = vpop.f32.mrf.mxu0  ;;  %v574_v20 = vpop.f32.mrf.mxu1 }
 0x116   :  { %v397_v21 = vpop.f32.mrf.mxu0  ;;  %v2125_v22 = vpop.f32.mrf.mxu1 }
 0x118   :  { %v399_v23 = vpop.f32.mrf.mxu0  ;;  %v579_v24 = vpop.f32.mrf.mxu1 }
 0x11a   :  { %v2127_v25 = vpop.f32.mrf.mxu0  ;;  %v2129_v26 = vpop.f32.mrf.mxu1 }
 0x11c   :  { %v404_v27 = vpop.f32.mrf.mxu0  ;;  %v584_v28 = vpop.f32.mrf.mxu1 }
 0x11e   :  { %v407_v29 = vpop.f32.mrf.mxu0  ;;  %v2131_v30 = vpop.f32.mrf.mxu1 }
 0x120   :  { %v409_v31 = vpop.f32.mrf.mxu0  ;;  %v589_v32 = vpop.f32.mrf.mxu1 }
 0x122   :  { %v2133_v33 = vpop.f32.mrf.mxu0  ;;  %v2135_v34 = vpop.f32.mrf.mxu1 }
 0x124   :  { %v414_v35 = vpop.f32.mrf.mxu0  ;;  %v594_v36 = vpop.f32.mrf.mxu1 }
 0x126   :  { %v417_v37 = vpop.f32.mrf.mxu0  ;;  %v2137_v38 = vpop.f32.mrf.mxu1 }
 0x128   :  { %v419_v39 = vpop.f32.mrf.mxu0  ;;  %v599_v40 = vpop.f32.mrf.mxu1 }
 0x12a   :  { %v2139_v41 = vpop.f32.mrf.mxu0  ;;  %v2141_v42 = vpop.f32.mrf.mxu1 }
 0x12c   :  { %v424_v43 = vpop.f32.mrf.mxu0  ;;  %v604_v44 = vpop.f32.mrf.mxu1 }
 0x12e   :  { %v2143_v45 = vpop.f32.mrf.mxu0  ;;  %v2145_v46 = vpop.f32.mrf.mxu1 }
 0x130   :  { %v429_v47 = vpop.f32.mrf.mxu0  ;;  %v609_v48 = vpop.f32.mrf.mxu1 }
 0x132   :  { %v2147_v49 = vpop.f32.mrf.mxu0  ;;  %v1317_v50 = vpop.f32.mrf.mxu1 }
 0x133   :  { %v683_v52 = vadd.f32 %v1317_v50, %v377_v5 }
 0x134   :  { %v434_v53 = vpop.f32.mrf.mxu0  ;;  %v677_v54 = vpop.f32.mrf.mxu1 }
 0x135   :  { %v1071_v55 = vadd.f32 %v2152_v51, %v683_v52  ;;  %v678_v56 = vadd.f32 %v677_v54, %v372_v1 }
 0x136   :  { %v2155_v57 = vpop.f32.mrf.mxu0  ;;  %v1320_v58 = vpop.f32.mrf.mxu1 }
 0x137   :  { %v1119_v59 = vmax.f32 %v1071_v55, 0.0  ;;  %v1070_v60 = vadd.f32 %v2152_v51, %v678_v56  ;;  %v693_v61 = vadd.f32 %v1320_v58, %v387_v13 }
 0x138   :  { %v439_v62 = vpop.f32.mrf.mxu0  ;;  %v687_v63 = vpop.f32.mrf.mxu1 }
 0x139   :  { %1167 = vst [vmem:[%s2382_s3 + $0x8] sm:$0xff] %v1119_v59  ;;  %v1118_v0 = vmax.f32 %v1070_v60, 0.0  ;;  %v1073_v3 = vadd.f32 %v2152_v51, %v693_v61  ;;  %v688_v4 = vadd.f32 %v687_v63, %v382_v9 }
 0x13a   :  { %v2162_v5 = vpop.f32.mrf.mxu0  ;;  %v1323_v1 = vpop.f32.mrf.mxu1 }
 0x13b   :  { %1166 = vst [vmem:[%s2382_s3] sm:$0xff] %v1118_v0  ;;  %v1121_v7 = vmax.f32 %v1073_v3, 0.0  ;;  %v1072_v8 = vadd.f32 %v2152_v51, %v688_v4  ;;  %v703_v11 = vadd.f32 %v1323_v1, %v397_v21 }
 0x13c   :  { %v444_v12 = vpop.f32.mrf.mxu0  ;;  %v697_v13 = vpop.f32.mrf.mxu1 }
 0x13d   :  { %1169 = vst [vmem:[%s2382_s3 + $0x18] sm:$0xff] %v1121_v7  ;;  %v1120_v15 = vmax.f32 %v1072_v8, 0.0  ;;  %v1075_v9 = vadd.f32 %v2152_v51, %v703_v11  ;;  %v698_v16 = vadd.f32 %v697_v13, %v2121_v17 }
 0x13e   :  { %v447_v19 = vpop.f32.mrf.mxu0  ;;  %v1326_v20 = vpop.f32.mrf.mxu1 }
 0x13f   :  { %1168 = vst [vmem:[%s2382_s3 + $0x10] sm:$0xff] %v1120_v15  ;;  %v1123_v23 = vmax.f32 %v1075_v9, 0.0  ;;  %v1074_v21 = vadd.f32 %v2152_v51, %v698_v16  ;;  %v713_v24 = vadd.f32 %v1326_v20, %v407_v29 }
 0x140   :  { %v449_v27 = vpop.f32.mrf.mxu0  ;;  %v707_v28 = vpop.f32.mrf.mxu1 }
 0x141   :  { %1171 = vst [vmem:[%s2382_s3 + $0x28] sm:$0xff] %v1123_v23  ;;  %v1122_v31 = vmax.f32 %v1074_v21, 0.0  ;;  %v1077_v32 = vadd.f32 %v2152_v51, %v713_v24  ;;  %v708_v17 = vadd.f32 %v707_v28, %v2127_v25 }
 0x142   :  { %v452_v35 = vpop.f32.mrf.mxu0  ;;  %v1329_v36 = vpop.f32.mrf.mxu1 }
 0x143   :  { %1170 = vst [vmem:[%s2382_s3 + $0x20] sm:$0xff] %v1122_v31  ;;  %v1125_v39 = vmax.f32 %v1077_v32, 0.0  ;;  %v1076_v29 = vadd.f32 %v2152_v51, %v708_v17  ;;  %v723_v40 = vadd.f32 %v1329_v36, %v417_v37 }
 0x144   :  { %v454_v43 = vpop.f32.mrf.mxu0  ;;  %v717_v44 = vpop.f32.mrf.mxu1 }
 0x145   :  { %1173 = vst [vmem:[%s2382_s3 + $0x38] sm:$0xff] %v1125_v39  ;;  %v1124_v47 = vmax.f32 %v1076_v29, 0.0  ;;  %v1079_v48 = vadd.f32 %v2152_v51, %v723_v40  ;;  %v718_v25 = vadd.f32 %v717_v44, %v2133_v33 }
 0x146   :  { %v457_v50 = vpop.f32.mrf.mxu0  ;;  %v1332_v52 = vpop.f32.mrf.mxu1 }
 0x147   :  { %1172 = vst [vmem:[%s2382_s3 + $0x30] sm:$0xff] %v1124_v47  ;;  %v1127_v53 = vmax.f32 %v1079_v48, 0.0  ;;  %v1078_v37 = vadd.f32 %v2152_v51, %v718_v25  ;;  %v733_v54 = vadd.f32 %v1332_v52, %v2143_v45 }
 0x148   :  { %v459_v55 = vpop.f32.mrf.mxu0  ;;  %v727_v56 = vpop.f32.mrf.mxu1 }
 0x149   :  { %1175 = vst [vmem:[%s2382_s3 + $0x48] sm:$0xff] %v1127_v53  ;;  %v1126_v58 = vmax.f32 %v1078_v37, 0.0  ;;  %v1081_v33 = vadd.f32 %v2152_v51, %v733_v54  ;;  %v728_v59 = vadd.f32 %v727_v56, %v2139_v41 }
 0x14a   :  { %v462_v60 = vpop.f32.mrf.mxu0  ;;  %v1335_v61 = vpop.f32.mrf.mxu1 }
 0x14b   :  { %1174 = vst [vmem:[%s2382_s3 + $0x40] sm:$0xff] %v1126_v58  ;;  %v1129_v62 = vmax.f32 %v1081_v33, 0.0  ;;  %v1080_v45 = vadd.f32 %v2152_v51, %v728_v59  ;;  %v743_v63 = vadd.f32 %v1335_v61, %v2155_v57 }
 0x14c   :  { %v464_v0 = vpop.f32.mrf.mxu0  ;;  %v737_v3 = vpop.f32.mrf.mxu1 }
 0x14d   :  { %1177 = vst [vmem:[%s2382_s3 + $0x58] sm:$0xff] %v1129_v62  ;;  %v1128_v4 = vmax.f32 %v1080_v45, 0.0  ;;  %v1083_v41 = vadd.f32 %v2152_v51, %v743_v63  ;;  %v738_v1 = vadd.f32 %v737_v3, %v2147_v49 }
 0x14e   :  { %v467_v7 = vpop.f32.mrf.mxu0  ;;  %v1338_v8 = vpop.f32.mrf.mxu1 }
 0x14f   :  { %1176 = vst [vmem:[%s2382_s3 + $0x50] sm:$0xff] %v1128_v4  ;;  %v1131_v11 = vmax.f32 %v1083_v41, 0.0  ;;  %v1082_v57 = vadd.f32 %v2152_v51, %v738_v1  ;;  %v753_v12 = vadd.f32 %v1338_v8, %v447_v19 }
 0x150   :  { %v469_v13 = vpop.f32.mrf.mxu0  ;;  %v747_v15 = vpop.f32.mrf.mxu1 }
 0x151   :  { %1179 = vst [vmem:[%s2382_s3 + $0x68] sm:$0xff] %v1131_v11  ;;  %v1130_v9 = vmax.f32 %v1082_v57, 0.0  ;;  %v1085_v16 = vadd.f32 %v2152_v51, %v753_v12  ;;  %v748_v49 = vadd.f32 %v747_v15, %v2162_v5 }
 0x152   :  { %v472_v20 = vpop.f32.mrf.mxu0  ;;  %v1341_v23 = vpop.f32.mrf.mxu1 }
 0x153   :  { %1178 = vst [vmem:[%s2382_s3 + $0x60] sm:$0xff] %v1130_v9  ;;  %v1133_v21 = vmax.f32 %v1085_v16, 0.0  ;;  %v1084_v19 = vadd.f32 %v2152_v51, %v748_v49  ;;  %v763_v24 = vadd.f32 %v1341_v23, %v457_v50 }
 0x154   :  { %v474_v27 = vpop.f32.mrf.mxu0  ;;  %v757_v28 = vpop.f32.mrf.mxu1 }
 0x155   :  { %1181 = vst [vmem:[%s2382_s3 + $0x78] sm:$0xff] %v1133_v21  ;;  %v1132_v31 = vmax.f32 %v1084_v19, 0.0  ;;  %v1087_v32 = vadd.f32 %v2152_v51, %v763_v24  ;;  %v758_v5 = vadd.f32 %v757_v28, %v452_v35 }
 0x156   :  { %v477_v17 = vpop.f32.mrf.mxu0  ;;  %v1344_v36 = vpop.f32.mrf.mxu1 }
 0x157   :  { %1180 = vst [vmem:[%s2382_s3 + $0x70] sm:$0xff] %v1132_v31  ;;  %v1135_v39 = vmax.f32 %v1087_v32, 0.0  ;;  %v1086_v29 = vadd.f32 %v2152_v51, %v758_v5  ;;  %v773_v40 = vadd.f32 %v1344_v36, %v467_v7 }
 0x158   :  { %v479_v43 = vpop.f32.mrf.mxu0  ;;  %v767_v44 = vpop.f32.mrf.mxu1 }
 0x159   :  { %1183 = vst [vmem:[%s2382_s3 + $0x88] sm:$0xff] %v1135_v39  ;;  %v1134_v47 = vmax.f32 %v1086_v29, 0.0  ;;  %v1089_v48 = vadd.f32 %v2152_v51, %v773_v40  ;;  %v768_v35 = vadd.f32 %v767_v44, %v462_v60 }
 0x15a   :  { %v482_v25 = vpop.f32.mrf.mxu0  ;;  %v1347_v50 = vpop.f32.mrf.mxu1 }
 0x15b   :  { %1182 = vst [vmem:[%s2382_s3 + $0x80] sm:$0xff] %v1134_v47  ;;  %v1137_v52 = vmax.f32 %v1089_v48, 0.0  ;;  %v1088_v53 = vadd.f32 %v2152_v51, %v768_v35  ;;  %v783_v37 = vadd.f32 %v1347_v50, %v477_v17 }
 0x15c   :  { %v484_v54 = vpop.f32.mrf.mxu0  ;;  %v777_v55 = vpop.f32.mrf.mxu1 }
 0x15d   :  { %1185 = vst [vmem:[%s2382_s3 + $0x98] sm:$0xff] %v1137_v52  ;;  %v1136_v56 = vmax.f32 %v1088_v53, 0.0  ;;  %v1091_v58 = vadd.f32 %v2152_v51, %v783_v37  ;;  %v778_v33 = vadd.f32 %v777_v55, %v472_v20 }
 0x15e   :  { %v487_v59 = vpop.f32.mrf.mxu0  ;;  %v1350_v60 = vpop.f32.mrf.mxu1 }
 0x15f   :  { %1184 = vst [vmem:[%s2382_s3 + $0x90] sm:$0xff] %v1136_v56  ;;  %v1139_v61 = vmax.f32 %v1091_v58, 0.0  ;;  %v1090_v62 = vadd.f32 %v2152_v51, %v778_v33  ;;  %v793_v45 = vadd.f32 %v1350_v60, %v487_v59 }
 0x160   :  { %v489_v63 = vpop.f32.mrf.mxu0  ;;  %v787_v0 = vpop.f32.mrf.mxu1 }
 0x161   :  { %1187 = vst [vmem:[%s2382_s3 + $0xa8] sm:$0xff] %v1139_v61  ;;  %v1138_v3 = vmax.f32 %v1090_v62, 0.0  ;;  %v1093_v4 = vadd.f32 %v2152_v51, %v793_v45  ;;  %v788_v41 = vadd.f32 %v787_v0, %v482_v25 }
 0x162   :  { %v492_v1 = vpop.f32.mrf.mxu0  ;;  %v1353_v7 = vpop.f32.mrf.mxu1 }
 0x163   :  { %1186 = vst [vmem:[%s2382_s3 + $0xa0] sm:$0xff] %v1138_v3  ;;  %v1141_v8 = vmax.f32 %v1093_v4, 0.0  ;;  %v1092_v11 = vadd.f32 %v2152_v51, %v788_v41 }
 0x164   :  { %v494_v57 = vpop.f32.mrf.mxu0  ;;  %v797_v12 = vpop.f32.mrf.mxu1 }
 0x165   :  { %1189 = vst [vmem:[%s2382_s3 + $0xb8] sm:$0xff] %v1141_v8  ;;  %v1140_v13 = vmax.f32 %v1092_v11, 0.0  ;;  %v798_v15 = vadd.f32 %v797_v12, %v492_v1 }
 0x166   :  { %v497_v9 = vpop.f32.mrf.mxu0  ;;  %v1356_v16 = vpop.f32.mrf.mxu1 }
 0x167   :  { %1188 = vst [vmem:[%s2382_s3 + $0xb0] sm:$0xff] %v1140_v13  ;;  %v1094_v49 = vadd.f32 %v2152_v51, %v798_v15  ;;  %v803_v20 = vadd.f32 %v1353_v7, %v497_v9 }
 0x168   :  { %v499_v23 = vpop.f32.mrf.mxu0  ;;  %v807_v21 = vpop.f32.mrf.mxu1 }
 0x169   :  { %v1142_v19 = vmax.f32 %v1094_v49, 0.0  ;;  %v1095_v24 = vadd.f32 %v2152_v51, %v803_v20 }
 0x16a   :  { %v502_v27 = vpop.f32.mrf.mxu0  ;;  %v1359_v28 = vpop.f32.mrf.mxu1 }
 0x16b   :  { %1190 = vst [vmem:[%s2382_s3 + $0xc0] sm:$0xff] %v1142_v19  ;;  %v1143_v31 = vmax.f32 %v1095_v24, 0.0  ;;  %v808_v32 = vadd.f32 %v807_v21, %v502_v27 }
 0x16c   :  { %v504_v5 = vpop.f32.mrf.mxu0  ;;  %v817_v17 = vpop.f32.mrf.mxu1 }
 0x16d   :  { %1191 = vst [vmem:[%s2382_s3 + $0xc8] sm:$0xff] %v1143_v31  ;;  %v1096_v36 = vadd.f32 %v2152_v51, %v808_v32 }
 0x16e   :  { %v507_v39 = vpop.f32.mrf.mxu0  ;;  %v1362_v29 = vpop.f32.mrf.mxu1 }
 0x16f   :  { %v1144_v40 = vmax.f32 %v1096_v36, 0.0  ;;  %v813_v43 = vadd.f32 %v1356_v16, %v507_v39 }
 0x170   :  { %v509_v44 = vpop.f32.mrf.mxu0  ;;  %v827_v47 = vpop.f32.mrf.mxu1 }
 0x171   :  { %1192 = vst [vmem:[%s2382_s3 + $0xd0] sm:$0xff] %v1144_v40  ;;  %v1097_v48 = vadd.f32 %v2152_v51, %v813_v43 }
 0x172   :  { %v512_v35 = vpop.f32.mrf.mxu0  ;;  %v2275_v25 = vpop.f32.mrf.mxu1 }
 0x173   :  { %v1145_v50 = vmax.f32 %v1097_v48, 0.0  ;;  %v818_v52 = vadd.f32 %v817_v17, %v512_v35 }
 0x174   :  { %v514_v53 = vpop.f32.mrf.mxu0  ;;  %v837_v37 = vpop.f32.mrf.mxu1 }
 0x175   :  { %1193 = vst [vmem:[%s2382_s3 + $0xd8] sm:$0xff] %v1145_v50  ;;  %v1098_v54 = vadd.f32 %v2152_v51, %v818_v52 }
 0x176   :  { %v517_v55 = vpop.f32.mrf.mxu0  ;;  %v2281_v56 = vpop.f32.mrf.mxu1 }
 0x177   :  { %v1146_v58 = vmax.f32 %v1098_v54, 0.0  ;;  %v823_v33 = vadd.f32 %v1359_v28, %v517_v55 }
 0x178   :  { %v519_v59 = vpop.f32.mrf.mxu0  ;;  %v2283_v60 = vpop.f32.mrf.mxu1 }
 0x179   :  { %1194 = vst [vmem:[%s2382_s3 + $0xe0] sm:$0xff] %v1146_v58  ;;  %v1099_v61 = vadd.f32 %v2152_v51, %v823_v33 }
 0x17a   :  { %v522_v62 = vpop.f32.mrf.mxu0  ;;  %v1371_v45 = vpop.f32.mrf.mxu1 }
 0x17b   :  { %v1147_v63 = vmax.f32 %v1099_v61, 0.0  ;;  %v828_v0 = vadd.f32 %v827_v47, %v522_v62  ;;  %v863_v3 = vadd.f32 %v1371_v45, %v2115_v6 }
 0x17c   :  { %v524_v4 = vpop.f32.mrf.mxu0  ;;  %v857_v41 = vpop.f32.mrf.mxu1 }
 0x17d   :  { %1195 = vst [vmem:[%s2382_s3 + $0xe8] sm:$0xff] %v1147_v63  ;;  %v1100_v1 = vadd.f32 %v2152_v51, %v828_v0  ;;  %v1107_v7 = vadd.f32 %v2152_v51, %v863_v3  ;;  %v858_v8 = vadd.f32 %v857_v41, %v2113_v2 }
 0x17e   :  { %v527_v11 = vpop.f32.mrf.mxu0  ;;  %v1374_v57 = vpop.f32.mrf.mxu1 }
 0x17f   :  { %v1148_v12 = vmax.f32 %v1100_v1, 0.0  ;;  %v1155_v13 = vmax.f32 %v1107_v7, 0.0  ;;  %v1106_v15 = vadd.f32 %v2152_v51, %v858_v8  ;;  %v833_v9 = vadd.f32 %v1362_v29, %v527_v11 }
 0x180   :  { %v873_v6 = vadd.f32 %v1374_v57, %v2119_v14  ;;  %v529_v16 = vpop.f32.mrf.mxu0  ;;  %v867_v49 = vpop.f32.mrf.mxu1 }
 0x181   :  { %1196 = vst [vmem:[%s2382_s3 + $0xf0] sm:$0xff] %v1148_v12  ;;  %1203 = vst [vmem:[%s2382_s3 + $0x128] sm:$0xff] %v1155_v13  ;;  %v1154_v2 = vmax.f32 %v1106_v15, 0.0  ;;  %v1101_v20 = vadd.f32 %v2152_v51, %v833_v9  ;;  %v868_v23 = vadd.f32 %v867_v49, %v2117_v10 }
 0x182   :  { %v1109_v21 = vadd.f32 %v2152_v51, %v873_v6  ;;  %v532_v19 = vpop.f32.mrf.mxu0  ;;  %v1377_v24 = vpop.f32.mrf.mxu1 }
 0x183   :  { %1202 = vst [vmem:[%s2382_s3 + $0x120] sm:$0xff] %v1154_v2  ;;  %v1149_v14 = vmax.f32 %v1101_v20, 0.0  ;;  %v1108_v27 = vadd.f32 %v2152_v51, %v868_v23  ;;  %v838_v28 = vadd.f32 %v837_v37, %v532_v19  ;;  %v883_v31 = vadd.f32 %v1377_v24, %v2125_v22 }
 0x184   :  { %v1157_v32 = vmax.f32 %v1109_v21, 0.0  ;;  %v534_v5 = vpop.f32.mrf.mxu0  ;;  %v877_v17 = vpop.f32.mrf.mxu1 }
 0x185   :  { %1197 = vst [vmem:[%s2382_s3 + $0xf8] sm:$0xff] %v1149_v14  ;;  %v1156_v10 = vmax.f32 %v1108_v27, 0.0  ;;  %v1102_v36 = vadd.f32 %v2152_v51, %v838_v28  ;;  %v1111_v39 = vadd.f32 %v2152_v51, %v883_v31  ;;  %v878_v29 = vadd.f32 %v877_v17, %v2123_v18 }
 0x186   :  { %1205 = vst [vmem:[%s2382_s3 + $0x138] sm:$0xff] %v1157_v32  ;;  %v537_v40 = vpop.f32.mrf.mxu0  ;;  %v1380_v22 = vpop.f32.mrf.mxu1 }
 0x187   :  { %1204 = vst [vmem:[%s2382_s3 + $0x130] sm:$0xff] %v1156_v10  ;;  %v1150_v43 = vmax.f32 %v1102_v36, 0.0  ;;  %v1159_v44 = vmax.f32 %v1111_v39, 0.0  ;;  %v1110_v47 = vadd.f32 %v2152_v51, %v878_v29  ;;  %v843_v48 = vadd.f32 %v2275_v25, %v537_v40 }
 0x188   :  { %v893_v35 = vadd.f32 %v1380_v22, %v2131_v30  ;;  %v539_v50 = vpop.f32.mrf.mxu0  ;;  %v887_v18 = vpop.f32.mrf.mxu1 }
 0x189   :  { %1198 = vst [vmem:[%s2382_s3 + $0x100] sm:$0xff] %v1150_v43  ;;  %1207 = vst [vmem:[%s2382_s3 + $0x148] sm:$0xff] %v1159_v44  ;;  %v1158_v52 = vmax.f32 %v1110_v47, 0.0  ;;  %v1103_v53 = vadd.f32 %v2152_v51, %v843_v48  ;;  %v888_v37 = vadd.f32 %v887_v18, %v2129_v26 }
 0x18a   :  { %v1113_v54 = vadd.f32 %v2152_v51, %v893_v35  ;;  %v542_v25 = vpop.f32.mrf.mxu0  ;;  %v1383_v55 = vpop.f32.mrf.mxu1 }
 0x18b   :  { %1206 = vst [vmem:[%s2382_s3 + $0x140] sm:$0xff] %v1158_v52  ;;  %v1151_v30 = vmax.f32 %v1103_v53, 0.0  ;;  %v1112_v58 = vadd.f32 %v2152_v51, %v888_v37  ;;  %v848_v33 = vadd.f32 %v2283_v60, %v542_v25  ;;  %v903_v59 = vadd.f32 %v1383_v55, %v2137_v38 }
 0x18c   :  { %v1161_v61 = vmax.f32 %v1113_v54, 0.0  ;;  %v544_v62 = vpop.f32.mrf.mxu0  ;;  %v897_v45 = vpop.f32.mrf.mxu1 }
 0x18d   :  { %1199 = vst [vmem:[%s2382_s3 + $0x108] sm:$0xff] %v1151_v30  ;;  %v1160_v26 = vmax.f32 %v1112_v58, 0.0  ;;  %v1104_v63 = vadd.f32 %v2152_v51, %v848_v33  ;;  %v1115_v0 = vadd.f32 %v2152_v51, %v903_v59  ;;  %v898_v3 = vadd.f32 %v897_v45, %v2135_v34 }
 0x18e   :  { %1209 = vst [vmem:[%s2382_s3 + $0x158] sm:$0xff] %v1161_v61  ;;  %v547_v60 = vpop.f32.mrf.mxu0  ;;  %v1386_v38 = vpop.f32.mrf.mxu1 }
 0x18f   :  { %1208 = vst [vmem:[%s2382_s3 + $0x150] sm:$0xff] %v1160_v26  ;;  %v1152_v4 = vmax.f32 %v1104_v63, 0.0  ;;  %v1163_v41 = vmax.f32 %v1115_v0, 0.0  ;;  %v1114_v1 = vadd.f32 %v2152_v51, %v898_v3  ;;  %v853_v7 = vadd.f32 %v2281_v56, %v547_v60 }
 0x190   :  { %v913_v8 = vadd.f32 %v1386_v38, %v2145_v46  ;;  %v907_v11 = vpop.f32.mrf.mxu1  ;;  %v549_v34 = vpop.f32.mrf.mxu0 }
 0x191   :  { %1200 = vst [vmem:[%s2382_s3 + $0x110] sm:$0xff] %v1152_v4  ;;  %1211 = vst [vmem:[%s2382_s3 + $0x168] sm:$0xff] %v1163_v41  ;;  %v1162_v57 = vmax.f32 %v1114_v1, 0.0  ;;  %v1105_v12 = vadd.f32 %v2152_v51, %v853_v7  ;;  %v908_v13 = vadd.f32 %v907_v11, %v2141_v42 }
 0x192   :  { %v1117_v15 = vadd.f32 %v2152_v51, %v913_v8 }
 0x193   :  { %1210 = vst [vmem:[%s2382_s3 + $0x160] sm:$0xff] %v1162_v57  ;;  %v1153_v46 = vmax.f32 %v1105_v12, 0.0  ;;  %v1116_v56 = vadd.f32 %v2152_v51, %v908_v13 }
 0x194   :  { %v1165_v9 = vmax.f32 %v1117_v15, 0.0 }
 0x195   :  { %1201 = vst [vmem:[%s2382_s3 + $0x118] sm:$0xff] %v1153_v46  ;;  %v1164_v6 = vmax.f32 %v1116_v56, 0.0 }
 0x196   :  { %1213 = vst [vmem:[%s2382_s3 + $0x178] sm:$0xff] %v1165_v9 }
 0x197   :  { %1212 = vst [vmem:[%s2382_s3 + $0x170] sm:$0xff] %v1164_v6 }

</bundles_post_ra>
